<compile_context>
chip_gen: v6e
topology: v6e:2x2x1
jax: 0.10.0
libtpu: 0.0.40
codegen_flags: <defaults>
</compile_context>

<pallas_src>
import jax
import jax.numpy as jnp
from jax.experimental import pallas as pl
from jax.experimental.pallas import tpu as pltpu


def _fold_conv_weights(w, W, dtype):
    """Pack a (3,3,3,Cin,Cout) kernel into a (9*W*Cin, W*Cout) block-Toeplitz matrix.

    Activations use lane index w*C + c (no W halo).  For each (kd, kh) tap the
    three kw taps and the SAME-padding edge clipping are absorbed into a banded
    (W*Cin, W*Cout) block:
      row = ((kd*3 + kh)*W + w_in)*Cin + cin,   col = w_out*Cout + cout,
      val = w[kd, kh, w_in - w_out + 1, cin, cout]  if |w_in - w_out| <= 1 else 0.
    """
    _, _, _, cin, cout = w.shape
    big = jnp.zeros((3, 3, W, cin, W, cout), dtype=jnp.float32)
    for kw in range(3):
        # Output w_out receives input w_in = w_out + kw - 1 (clipped to [0, W)).
        w_out = jnp.arange(max(0, 1 - kw), min(W, W + 1 - kw))
        w_in = w_out + (kw - 1)
        # Advanced indices separated by a basic slice -> indexed dim moves to the
        # front: target shape (len, 3, 3, cin, cout).
        big = big.at[:, :, w_in, :, w_out, :].set(
            jnp.broadcast_to(w[:, :, kw][None].astype(jnp.float32),
                             (int(w_out.shape[0]), 3, 3, cin, cout)))
    return big.reshape(9 * W * cin, W * cout).astype(dtype)


def _make_conv_block_kernel(n_stages, D, H, W, c_in, c_out, compute_dtype):
    Hp = H + 2
    R = (D + 2) * Hp + 8        # flat padded rows (+ margin read only by junk rows)
    M = D * Hp                  # matmul M (D*H real output rows + 2*D junk rows)
    L_in, L_out = W * c_in, W * c_out

    def kernel(*refs):
        x_ref = refs[0]
        wb = refs[1:1 + 2 * n_stages]
        o_ref = refs[1 + 2 * n_stages]
        buf_in = refs[2 + 2 * n_stages]
        buf_mid = refs[3 + 2 * n_stages] if n_stages > 1 else None

        # ---- halo init: only the halo faces, never the whole buffer ---------
        # Every row of every scratch buffer is rewritten each grid step, so each
        # core's scratch instance is valid under megacore sharding.
        lead = Hp + 1                       # leading d-plane + first h-halo row
        tail0 = (D + 1) * Hp + 1            # rest of trailing d-plane + margin
        buf_in[0:lead, :] = jnp.zeros((lead, L_in), compute_dtype)
        buf_in[tail0:R, :] = jnp.zeros((R - tail0, L_in), compute_dtype)
        if n_stages > 1:
            buf_mid[0:lead, :] = jnp.zeros((lead, L_out), compute_dtype)
            buf_mid[tail0:R, :] = jnp.zeros((R - tail0, L_out), compute_dtype)

        # ---- stage-0 staging: lane-dense interior planes + 2-row separators --
        zsep_in = jnp.zeros((2, L_in), compute_dtype)
        for d in range(D):                  # static unroll; D is small here
            r0 = (d + 1) * Hp + 1
            buf_in[r0:r0 + H, :] = x_ref[0, d].astype(compute_dtype)
            buf_in[r0 + H:r0 + H + 2, :] = zsep_in

        zsep_out = jnp.zeros((2, L_out), compute_dtype)
        src, k_lanes = buf_in, L_in
        for s in range(n_stages):
            w_ref = wb[2 * s]               # (9*W*C_s, W*Cout) block-Toeplitz
            b_ref = wb[2 * s + 1]           # (1, W*Cout), f32
            K = k_lanes
            # 9 (kd, kh) taps; kw lives inside the Toeplitz weight.  Each tap's
            # slab is a contiguous leading-dim slice -> one deep-K MXU matmul,
            # M = D*(H+2), N = W*Cout (>=128 lanes at real MCNet configs).
            # Two partial accumulators break the serial MXU-pop add chain.
            acc0 = jnp.zeros((M, L_out), jnp.float32)
            acc1 = jnp.zeros((M, L_out), jnp.float32)
            for t in range(9):
                kd, kh = divmod(t, 3)
                off = kd * Hp + kh
                part = jnp.dot(src[off:off + M, :],
                               w_ref[t * K:(t + 1) * K, :],
                               preferred_element_type=jnp.float32)
                if t % 2 == 0:
                    acc0 = acc0 + part
                else:
                    acc1 = acc1 + part
            acc = jnp.maximum(acc0 + acc1 + b_ref[...], 0.0)     # bias + ReLU

            if s == n_stages - 1:
                # Lane-dense final stores, real rows only.
                for d in range(D):
                    o_ref[0, d] = acc[d * Hp:d * Hp + H, :].astype(o_ref.dtype)
            else:
                # One lane-dense bulk store: real rows land on the interior, the
                # 2*D junk rows land exactly on the h-halo separator rows, which
                # are re-zeroed right below with tiny 2-row stores.
                buf_mid[Hp + 1:Hp + 1 + M, :] = acc.astype(compute_dtype)
                for d in range(D):
                    r0 = (d + 1) * Hp + 1 + H
                    buf_mid[r0:r0 + 2, :] = zsep_out
                src, k_lanes = buf_mid, L_out

    return kernel


def conv_block_forward(params, x_ncdhw, compute_dtype=jnp.float32):
    """ConvBlock forward (normalization='none'), NCDHW in / NCDHW out.

    params: list of (w, b) with w: (3,3,3,Cin_s,Cout) and b: (Cout,).
    compute_dtype: dtype of the MXU operands (activations + folded weights);
                   accumulation is always f32.  Use jnp.bfloat16 on v5e/v6e/v7x
                   for the bf16-native MXU (relative error ~1e-3).
    """
    N, Cin, D, H, W = x_ncdhw.shape
    n_stages = len(params)
    Cout = params[0][1].shape[0]
    Hp = H + 2
    R = (D + 2) * Hp + 8
    csize = jnp.dtype(compute_dtype).itemsize

    # NCDHW -> NDHWC, fold (W, C) into the trailing (lane) dim.
    x = jnp.transpose(x_ncdhw, (0, 2, 3, 4, 1)).reshape(N, D, H, W * Cin)
    x = x.astype(compute_dtype)

    flat_inputs = [x]
    in_specs = [pl.BlockSpec((1, D, H, W * Cin), lambda n: (n, 0, 0, 0))]
    flops = 0
    for s, (w, b) in enumerate(params):
        c_s = Cin if s == 0 else Cout
        bw = _fold_conv_weights(w, W, compute_dtype)          # (9*W*c_s, W*Cout)
        bb = jnp.tile(b.astype(jnp.float32), (W,)).reshape(1, W * Cout)
        flat_inputs += [bw, bb]
        in_specs += [
            pl.BlockSpec(bw.shape, lambda n: (0, 0)),
            pl.BlockSpec(bb.shape, lambda n: (0, 0)),
        ]
        # FLOPs actually executed (dense block-Toeplitz), per review note.
        flops += 2 * N * 9 * (D * Hp) * (W * c_s) * (W * Cout)

    weight_bytes = sum(int(a.size) * jnp.dtype(a.dtype).itemsize
                       for a in flat_inputs[1:])
    bytes_accessed = int(x.size) * csize + weight_bytes + N * D * H * W * Cout * 4

    # VMEM footprint: scratch + double-buffered in/out blocks + buffered weights.
    scratch_bytes = R * W * Cin * csize + (R * W * Cout * csize if n_stages > 1 else 0)
    block_bytes = D * H * W * Cin * csize + D * H * W * Cout * 4
    footprint = scratch_bytes + 2 * block_bytes + 2 * weight_bytes
    vmem_limit = int(min(100 * 2 ** 20, max(16 * 2 ** 20, 2 * footprint)))

    kernel = _make_conv_block_kernel(n_stages, D, H, W, Cin, Cout, compute_dtype)
    scratch_shapes = [pltpu.VMEM((R, W * Cin), compute_dtype)]
    if n_stages > 1:
        scratch_shapes.append(pltpu.VMEM((R, W * Cout), compute_dtype))

    out = pl.pallas_call(
        kernel,
        out_shape=jax.ShapeDtypeStruct((N, D, H, W * Cout), jnp.float32),
        grid_spec=pltpu.PrefetchScalarGridSpec(
            num_scalar_prefetch=0,
            grid=(N,),
            in_specs=in_specs,
            out_specs=pl.BlockSpec((1, D, H, W * Cout), lambda n: (n, 0, 0, 0)),
            scratch_shapes=scratch_shapes,
        ),
        compiler_params=pltpu.CompilerParams(
            dimension_semantics=("parallel",),
            vmem_limit_bytes=vmem_limit,
        ),
        cost_estimate=pl.CostEstimate(
            flops=int(flops), transcendentals=0, bytes_accessed=int(bytes_accessed)),
    )(*flat_inputs)

    # (N, D, H, W*Cout) -> (N, D, H, W, Cout) -> NCDHW.
    out = out.reshape(N, D, H, W, Cout)
    return jnp.transpose(out, (0, 4, 1, 2, 3))


def init_conv_block_params(key, n_stages, n_filters_in, n_filters_out):
    """Deterministic init mimicking PyTorch Conv3d default (uniform +/- 1/sqrt(fan_in))."""
    params = []
    cin = n_filters_in
    for _ in range(n_stages):
        key, kw_, kb_ = jax.random.split(key, 3)
        fan_in = cin * 3 * 3 * 3
        bound = 1.0 / float(fan_in) ** 0.5
        w = jax.random.uniform(kw_, (3, 3, 3, cin, n_filters_out),
                               jnp.float32, -bound, bound)
        b = jax.random.uniform(kb_, (n_filters_out,), jnp.float32, -bound, bound)
        params.append((w, b))
        cin = n_filters_out
    return params


def _reference_conv_block(params, x):
    ref = x
    for w, b in params:
        w_oidhw = jnp.transpose(w, (4, 3, 0, 1, 2))   # (Cout, Cin, 3, 3, 3)
        ref = jax.lax.conv_general_dilated(
            ref, w_oidhw, window_strides=(1, 1, 1), padding="SAME",
            dimension_numbers=("NCDHW", "OIDHW", "NCDHW"))
        ref = jax.nn.relu(ref + b.reshape(1, -1, 1, 1, 1))
    return ref


if __name__ == "__main__":
    key = jax.random.PRNGKey(0)
    kx, kp, kx2, kp2 = jax.random.split(key, 4)

    # ConvBlock(n_stages=2, n_filters_in=4, n_filters_out=8, normalization='none')
    N, Cin, D, H, W = 2, 4, 8, 8, 8
    n_stages, Cout = 2, 8

    x = jax.random.normal(kx, (N, Cin, D, H, W), jnp.float32)
    params = init_conv_block_params(kp, n_stages, Cin, Cout)

    fwd = jax.jit(conv_block_forward, static_argnames=("compute_dtype",))

    # 1) exact f32 path.
    out = jax.block_until_ready(fwd(params, x))
    ref = _reference_conv_block(params, x)
    assert out.shape == (N, Cout, D, H, W)
    assert jnp.allclose(out, ref, atol=1e-4, rtol=1e-4)

    # 2) bf16 MXU operands, f32 accumulation (bf16-native MXU on v5e/v6e/v7x).
    out_bf16 = jax.block_until_ready(fwd(params, x, compute_dtype=jnp.bfloat16))
    assert jnp.allclose(out_bf16, ref, atol=3e-2, rtol=3e-2)

    # 3) single-stage block, odd channel count, non-cubic volume, batch 1.
    x2 = jax.random.normal(kx2, (1, 3, 6, 10, 8), jnp.float32)
    params2 = init_conv_block_params(kp2, 1, 3, 16)
    out2 = jax.block_until_ready(fwd(params2, x2))
    ref2 = _reference_conv_block(params2, x2)
    assert out2.shape == (1, 16, 6, 10, 8)
    assert jnp.allclose(out2, ref2, atol=1e-4, rtol=1e-4)

    print("KERNEL_OK")
</pallas_src>

<mosaic_0001>
module attributes {stable_mosaic.version = 11 : i64} {
  func.func @kernel(%arg0: i32, %arg1: memref<1x8x8x32xf32, #tpu.memory_space<vmem>>, %arg2: memref<288x64xf32, #tpu.memory_space<vmem>>, %arg3: memref<1x64xf32, #tpu.memory_space<vmem>>, %arg4: memref<576x64xf32, #tpu.memory_space<vmem>>, %arg5: memref<1x64xf32, #tpu.memory_space<vmem>>, %arg6: memref<1x8x8x64xf32, #tpu.memory_space<vmem>>, %arg7: memref<108x32xf32, #tpu.memory_space<vmem>>, %arg8: memref<108x64xf32, #tpu.memory_space<vmem>>) attributes {dimension_semantics = [#tpu.dimension_semantics<parallel>], iteration_bounds = array<i64: 2>, scalar_prefetch = 0 : i64, scratch_operands = 2 : i64, tpu.core_type = #tpu.core_type<tc>, window_params = [{transform_indices = @transform_0, window_bounds = array<i64: 1, 8, 8, 32>}, {pipeline_mode = #tpu.pipeline_mode<synchronous>, transform_indices = @transform_1, window_bounds = array<i64: 288, 64>}, {pipeline_mode = #tpu.pipeline_mode<synchronous>, transform_indices = @transform_2, window_bounds = array<i64: 1, 64>}, {pipeline_mode = #tpu.pipeline_mode<synchronous>, transform_indices = @transform_3, window_bounds = array<i64: 576, 64>}, {pipeline_mode = #tpu.pipeline_mode<synchronous>, transform_indices = @transform_4, window_bounds = array<i64: 1, 64>}, {transform_indices = @transform_5, window_bounds = array<i64: 1, 8, 8, 64>}]} {
    %cst = arith.constant 0.000000e+00 : f32
    %0 = vector.broadcast %cst : f32 to vector<11x32xf32>
    %c0 = arith.constant 0 : index
    %c0_0 = arith.constant 0 : index
    %1 = vector.load %arg7[%c0, %c0_0] : memref<108x32xf32, #tpu.memory_space<vmem>>, vector<11x32xf32>
    tpu.vector_store %arg7[%c0, %c0_0], %0 {strides = array<i32>} : memref<108x32xf32, #tpu.memory_space<vmem>>, vector<11x32xf32>,
    %cst_1 = arith.constant 0.000000e+00 : f32
    %2 = vector.broadcast %cst_1 : f32 to vector<17x32xf32>
    %c91 = arith.constant 91 : index
    %c0_2 = arith.constant 0 : index
    %3 = vector.load %arg7[%c91, %c0_2] : memref<108x32xf32, #tpu.memory_space<vmem>>, vector<17x32xf32>
    tpu.vector_store %arg7[%c91, %c0_2], %2 {strides = array<i32>} : memref<108x32xf32, #tpu.memory_space<vmem>>, vector<17x32xf32>,
    %cst_3 = arith.constant 0.000000e+00 : f32
    %4 = vector.broadcast %cst_3 : f32 to vector<11x64xf32>
    %c0_4 = arith.constant 0 : index
    %c0_5 = arith.constant 0 : index
    %5 = vector.load %arg8[%c0_4, %c0_5] : memref<108x64xf32, #tpu.memory_space<vmem>>, vector<11x64xf32>
    tpu.vector_store %arg8[%c0_4, %c0_5], %4 {strides = array<i32>} : memref<108x64xf32, #tpu.memory_space<vmem>>, vector<11x64xf32>,
    %cst_6 = arith.constant 0.000000e+00 : f32
    %6 = vector.broadcast %cst_6 : f32 to vector<17x64xf32>
    %c91_7 = arith.constant 91 : index
    %c0_8 = arith.constant 0 : index
    %7 = vector.load %arg8[%c91_7, %c0_8] : memref<108x64xf32, #tpu.memory_space<vmem>>, vector<17x64xf32>
    tpu.vector_store %arg8[%c91_7, %c0_8], %6 {strides = array<i32>} : memref<108x64xf32, #tpu.memory_space<vmem>>, vector<17x64xf32>,
    %cst_9 = arith.constant 0.000000e+00 : f32
    %8 = vector.broadcast %cst_9 : f32 to vector<2x32xf32>
    %c0_10 = arith.constant 0 : index
    %c0_11 = arith.constant 0 : index
    %c0_12 = arith.constant 0 : index
    %c0_13 = arith.constant 0 : index
    %9 = vector.load %arg1[%c0_10, %c0_11, %c0_12, %c0_13] : memref<1x8x8x32xf32, #tpu.memory_space<vmem>>, vector<1x1x8x32xf32>
    %10 = vector.shape_cast %9 : vector<1x1x8x32xf32> to vector<8x32xf32>
    %c11 = arith.constant 11 : index
    %c0_14 = arith.constant 0 : index
    %11 = vector.load %arg7[%c11, %c0_14] : memref<108x32xf32, #tpu.memory_space<vmem>>, vector<8x32xf32>
    tpu.vector_store %arg7[%c11, %c0_14], %10 {strides = array<i32>} : memref<108x32xf32, #tpu.memory_space<vmem>>, vector<8x32xf32>,
    %c19 = arith.constant 19 : index
    %c0_15 = arith.constant 0 : index
    %12 = vector.load %arg7[%c19, %c0_15] : memref<108x32xf32, #tpu.memory_space<vmem>>, vector<2x32xf32>
    tpu.vector_store %arg7[%c19, %c0_15], %8 {strides = array<i32>} : memref<108x32xf32, #tpu.memory_space<vmem>>, vector<2x32xf32>,
    %c0_16 = arith.constant 0 : index
    %c1 = arith.constant 1 : index
    %c0_17 = arith.constant 0 : index
    %c0_18 = arith.constant 0 : index
    %13 = vector.load %arg1[%c0_16, %c1, %c0_17, %c0_18] : memref<1x8x8x32xf32, #tpu.memory_space<vmem>>, vector<1x1x8x32xf32>
    %14 = vector.shape_cast %13 : vector<1x1x8x32xf32> to vector<8x32xf32>
    %c21 = arith.constant 21 : index
    %c0_19 = arith.constant 0 : index
    %15 = vector.load %arg7[%c21, %c0_19] : memref<108x32xf32, #tpu.memory_space<vmem>>, vector<8x32xf32>
    tpu.vector_store %arg7[%c21, %c0_19], %14 {strides = array<i32>} : memref<108x32xf32, #tpu.memory_space<vmem>>, vector<8x32xf32>,
    %c29 = arith.constant 29 : index
    %c0_20 = arith.constant 0 : index
    %16 = vector.load %arg7[%c29, %c0_20] : memref<108x32xf32, #tpu.memory_space<vmem>>, vector<2x32xf32>
    tpu.vector_store %arg7[%c29, %c0_20], %8 {strides = array<i32>} : memref<108x32xf32, #tpu.memory_space<vmem>>, vector<2x32xf32>,
    %c0_21 = arith.constant 0 : index
    %c2 = arith.constant 2 : index
    %c0_22 = arith.constant 0 : index
    %c0_23 = arith.constant 0 : index
    %17 = vector.load %arg1[%c0_21, %c2, %c0_22, %c0_23] : memref<1x8x8x32xf32, #tpu.memory_space<vmem>>, vector<1x1x8x32xf32>
    %18 = vector.shape_cast %17 : vector<1x1x8x32xf32> to vector<8x32xf32>
    %c31 = arith.constant 31 : index
    %c0_24 = arith.constant 0 : index
    %19 = vector.load %arg7[%c31, %c0_24] : memref<108x32xf32, #tpu.memory_space<vmem>>, vector<8x32xf32>
    tpu.vector_store %arg7[%c31, %c0_24], %18 {strides = array<i32>} : memref<108x32xf32, #tpu.memory_space<vmem>>, vector<8x32xf32>,
    %c39 = arith.constant 39 : index
    %c0_25 = arith.constant 0 : index
    %20 = vector.load %arg7[%c39, %c0_25] : memref<108x32xf32, #tpu.memory_space<vmem>>, vector<2x32xf32>
    tpu.vector_store %arg7[%c39, %c0_25], %8 {strides = array<i32>} : memref<108x32xf32, #tpu.memory_space<vmem>>, vector<2x32xf32>,
    %c0_26 = arith.constant 0 : index
    %c3 = arith.constant 3 : index
    %c0_27 = arith.constant 0 : index
    %c0_28 = arith.constant 0 : index
    %21 = vector.load %arg1[%c0_26, %c3, %c0_27, %c0_28] : memref<1x8x8x32xf32, #tpu.memory_space<vmem>>, vector<1x1x8x32xf32>
    %22 = vector.shape_cast %21 : vector<1x1x8x32xf32> to vector<8x32xf32>
    %c41 = arith.constant 41 : index
    %c0_29 = arith.constant 0 : index
    %23 = vector.load %arg7[%c41, %c0_29] : memref<108x32xf32, #tpu.memory_space<vmem>>, vector<8x32xf32>
    tpu.vector_store %arg7[%c41, %c0_29], %22 {strides = array<i32>} : memref<108x32xf32, #tpu.memory_space<vmem>>, vector<8x32xf32>,
    %c49 = arith.constant 49 : index
    %c0_30 = arith.constant 0 : index
    %24 = vector.load %arg7[%c49, %c0_30] : memref<108x32xf32, #tpu.memory_space<vmem>>, vector<2x32xf32>
    tpu.vector_store %arg7[%c49, %c0_30], %8 {strides = array<i32>} : memref<108x32xf32, #tpu.memory_space<vmem>>, vector<2x32xf32>,
    %c0_31 = arith.constant 0 : index
    %c4 = arith.constant 4 : index
    %c0_32 = arith.constant 0 : index
    %c0_33 = arith.constant 0 : index
    %25 = vector.load %arg1[%c0_31, %c4, %c0_32, %c0_33] : memref<1x8x8x32xf32, #tpu.memory_space<vmem>>, vector<1x1x8x32xf32>
    %26 = vector.shape_cast %25 : vector<1x1x8x32xf32> to vector<8x32xf32>
    %c51 = arith.constant 51 : index
    %c0_34 = arith.constant 0 : index
    %27 = vector.load %arg7[%c51, %c0_34] : memref<108x32xf32, #tpu.memory_space<vmem>>, vector<8x32xf32>
    tpu.vector_store %arg7[%c51, %c0_34], %26 {strides = array<i32>} : memref<108x32xf32, #tpu.memory_space<vmem>>, vector<8x32xf32>,
    %c59 = arith.constant 59 : index
    %c0_35 = arith.constant 0 : index
    %28 = vector.load %arg7[%c59, %c0_35] : memref<108x32xf32, #tpu.memory_space<vmem>>, vector<2x32xf32>
    tpu.vector_store %arg7[%c59, %c0_35], %8 {strides = array<i32>} : memref<108x32xf32, #tpu.memory_space<vmem>>, vector<2x32xf32>,
    %c0_36 = arith.constant 0 : index
    %c5 = arith.constant 5 : index
    %c0_37 = arith.constant 0 : index
    %c0_38 = arith.constant 0 : index
    %29 = vector.load %arg1[%c0_36, %c5, %c0_37, %c0_38] : memref<1x8x8x32xf32, #tpu.memory_space<vmem>>, vector<1x1x8x32xf32>
    %30 = vector.shape_cast %29 : vector<1x1x8x32xf32> to vector<8x32xf32>
    %c61 = arith.constant 61 : index
    %c0_39 = arith.constant 0 : index
    %31 = vector.load %arg7[%c61, %c0_39] : memref<108x32xf32, #tpu.memory_space<vmem>>, vector<8x32xf32>
    tpu.vector_store %arg7[%c61, %c0_39], %30 {strides = array<i32>} : memref<108x32xf32, #tpu.memory_space<vmem>>, vector<8x32xf32>,
    %c69 = arith.constant 69 : index
    %c0_40 = arith.constant 0 : index
    %32 = vector.load %arg7[%c69, %c0_40] : memref<108x32xf32, #tpu.memory_space<vmem>>, vector<2x32xf32>
    tpu.vector_store %arg7[%c69, %c0_40], %8 {strides = array<i32>} : memref<108x32xf32, #tpu.memory_space<vmem>>, vector<2x32xf32>,
    %c0_41 = arith.constant 0 : index
    %c6 = arith.constant 6 : index
    %c0_42 = arith.constant 0 : index
    %c0_43 = arith.constant 0 : index
    %33 = vector.load %arg1[%c0_41, %c6, %c0_42, %c0_43] : memref<1x8x8x32xf32, #tpu.memory_space<vmem>>, vector<1x1x8x32xf32>
    %34 = vector.shape_cast %33 : vector<1x1x8x32xf32> to vector<8x32xf32>
    %c71 = arith.constant 71 : index
    %c0_44 = arith.constant 0 : index
    %35 = vector.load %arg7[%c71, %c0_44] : memref<108x32xf32, #tpu.memory_space<vmem>>, vector<8x32xf32>
    tpu.vector_store %arg7[%c71, %c0_44], %34 {strides = array<i32>} : memref<108x32xf32, #tpu.memory_space<vmem>>, vector<8x32xf32>,
    %c79 = arith.constant 79 : index
    %c0_45 = arith.constant 0 : index
    %36 = vector.load %arg7[%c79, %c0_45] : memref<108x32xf32, #tpu.memory_space<vmem>>, vector<2x32xf32>
    tpu.vector_store %arg7[%c79, %c0_45], %8 {strides = array<i32>} : memref<108x32xf32, #tpu.memory_space<vmem>>, vector<2x32xf32>,
    %c0_46 = arith.constant 0 : index
    %c7 = arith.constant 7 : index
    %c0_47 = arith.constant 0 : index
    %c0_48 = arith.constant 0 : index
    %37 = vector.load %arg1[%c0_46, %c7, %c0_47, %c0_48] : memref<1x8x8x32xf32, #tpu.memory_space<vmem>>, vector<1x1x8x32xf32>
    %38 = vector.shape_cast %37 : vector<1x1x8x32xf32> to vector<8x32xf32>
    %c81 = arith.constant 81 : index
    %c0_49 = arith.constant 0 : index
    %39 = vector.load %arg7[%c81, %c0_49] : memref<108x32xf32, #tpu.memory_space<vmem>>, vector<8x32xf32>
    tpu.vector_store %arg7[%c81, %c0_49], %38 {strides = array<i32>} : memref<108x32xf32, #tpu.memory_space<vmem>>, vector<8x32xf32>,
    %c89 = arith.constant 89 : index
    %c0_50 = arith.constant 0 : index
    %40 = vector.load %arg7[%c89, %c0_50] : memref<108x32xf32, #tpu.memory_space<vmem>>, vector<2x32xf32>
    tpu.vector_store %arg7[%c89, %c0_50], %8 {strides = array<i32>} : memref<108x32xf32, #tpu.memory_space<vmem>>, vector<2x32xf32>,
    %cst_51 = arith.constant 0.000000e+00 : f32
    %41 = vector.broadcast %cst_51 : f32 to vector<2x64xf32>
    %cst_52 = arith.constant 0.000000e+00 : f32
    %42 = vector.broadcast %cst_52 : f32 to vector<80x64xf32>
    %cst_53 = arith.constant 0.000000e+00 : f32
    %43 = vector.broadcast %cst_53 : f32 to vector<80x64xf32>
    %c0_54 = arith.constant 0 : index
    %c0_55 = arith.constant 0 : index
    %44 = vector.load %arg7[%c0_54, %c0_55] : memref<108x32xf32, #tpu.memory_space<vmem>>, vector<80x32xf32>
    %c0_56 = arith.constant 0 : index
    %c0_57 = arith.constant 0 : index
    %45 = vector.load %arg2[%c0_56, %c0_57] : memref<288x64xf32, #tpu.memory_space<vmem>>, vector<32x64xf32>
    %cst_58 = arith.constant dense<0.000000e+00> : vector<80x64xf32>
    %46 = tpu.matmul %44, %45, %cst_58 {dimension_numbers = #tpu.dot_dimension_numbers<[1], [0], [0], [1], [0, 0, 1, 1], [], []>} : vector<80x32xf32>, vector<32x64xf32>, vector<80x64xf32> -> vector<80x64xf32>
    %47 = arith.addf %42, %46 : vector<80x64xf32>
    %c1_59 = arith.constant 1 : index
    %c0_60 = arith.constant 0 : index
    %48 = vector.load %arg7[%c1_59, %c0_60] : memref<108x32xf32, #tpu.memory_space<vmem>>, vector<80x32xf32>
    %c32 = arith.constant 32 : index
    %c0_61 = arith.constant 0 : index
    %49 = vector.load %arg2[%c32, %c0_61] : memref<288x64xf32, #tpu.memory_space<vmem>>, vector<32x64xf32>
    %cst_62 = arith.constant dense<0.000000e+00> : vector<80x64xf32>
    %50 = tpu.matmul %48, %49, %cst_62 {dimension_numbers = #tpu.dot_dimension_numbers<[1], [0], [0], [1], [0, 0, 1, 1], [], []>} : vector<80x32xf32>, vector<32x64xf32>, vector<80x64xf32> -> vector<80x64xf32>
    %51 = arith.addf %43, %50 : vector<80x64xf32>
    %c2_63 = arith.constant 2 : index
    %c0_64 = arith.constant 0 : index
    %52 = vector.load %arg7[%c2_63, %c0_64] : memref<108x32xf32, #tpu.memory_space<vmem>>, vector<80x32xf32>
    %c64 = arith.constant 64 : index
    %c0_65 = arith.constant 0 : index
    %53 = vector.load %arg2[%c64, %c0_65] : memref<288x64xf32, #tpu.memory_space<vmem>>, vector<32x64xf32>
    %cst_66 = arith.constant dense<0.000000e+00> : vector<80x64xf32>
    %54 = tpu.matmul %52, %53, %cst_66 {dimension_numbers = #tpu.dot_dimension_numbers<[1], [0], [0], [1], [0, 0, 1, 1], [], []>} : vector<80x32xf32>, vector<32x64xf32>, vector<80x64xf32> -> vector<80x64xf32>
    %55 = arith.addf %47, %54 : vector<80x64xf32>
    %c10 = arith.constant 10 : index
    %c0_67 = arith.constant 0 : index
    %56 = vector.load %arg7[%c10, %c0_67] : memref<108x32xf32, #tpu.memory_space<vmem>>, vector<80x32xf32>
    %c96 = arith.constant 96 : index
    %c0_68 = arith.constant 0 : index
    %57 = vector.load %arg2[%c96, %c0_68] : memref<288x64xf32, #tpu.memory_space<vmem>>, vector<32x64xf32>
    %cst_69 = arith.constant dense<0.000000e+00> : vector<80x64xf32>
    %58 = tpu.matmul %56, %57, %cst_69 {dimension_numbers = #tpu.dot_dimension_numbers<[1], [0], [0], [1], [0, 0, 1, 1], [], []>} : vector<80x32xf32>, vector<32x64xf32>, vector<80x64xf32> -> vector<80x64xf32>
    %59 = arith.addf %51, %58 : vector<80x64xf32>
    %c11_70 = arith.constant 11 : index
    %c0_71 = arith.constant 0 : index
    %60 = vector.load %arg7[%c11_70, %c0_71] : memref<108x32xf32, #tpu.memory_space<vmem>>, vector<80x32xf32>
    %c128 = arith.constant 128 : index
    %c0_72 = arith.constant 0 : index
    %61 = vector.load %arg2[%c128, %c0_72] : memref<288x64xf32, #tpu.memory_space<vmem>>, vector<32x64xf32>
    %cst_73 = arith.constant dense<0.000000e+00> : vector<80x64xf32>
    %62 = tpu.matmul %60, %61, %cst_73 {dimension_numbers = #tpu.dot_dimension_numbers<[1], [0], [0], [1], [0, 0, 1, 1], [], []>} : vector<80x32xf32>, vector<32x64xf32>, vector<80x64xf32> -> vector<80x64xf32>
    %63 = arith.addf %55, %62 : vector<80x64xf32>
    %c12 = arith.constant 12 : index
    %c0_74 = arith.constant 0 : index
    %64 = vector.load %arg7[%c12, %c0_74] : memref<108x32xf32, #tpu.memory_space<vmem>>, vector<80x32xf32>
    %c160 = arith.constant 160 : index
    %c0_75 = arith.constant 0 : index
    %65 = vector.load %arg2[%c160, %c0_75] : memref<288x64xf32, #tpu.memory_space<vmem>>, vector<32x64xf32>
    %cst_76 = arith.constant dense<0.000000e+00> : vector<80x64xf32>
    %66 = tpu.matmul %64, %65, %cst_76 {dimension_numbers = #tpu.dot_dimension_numbers<[1], [0], [0], [1], [0, 0, 1, 1], [], []>} : vector<80x32xf32>, vector<32x64xf32>, vector<80x64xf32> -> vector<80x64xf32>
    %67 = arith.addf %59, %66 : vector<80x64xf32>
    %c20 = arith.constant 20 : index
    %c0_77 = arith.constant 0 : index
    %68 = vector.load %arg7[%c20, %c0_77] : memref<108x32xf32, #tpu.memory_space<vmem>>, vector<80x32xf32>
    %c192 = arith.constant 192 : index
    %c0_78 = arith.constant 0 : index
    %69 = vector.load %arg2[%c192, %c0_78] : memref<288x64xf32, #tpu.memory_space<vmem>>, vector<32x64xf32>
    %cst_79 = arith.constant dense<0.000000e+00> : vector<80x64xf32>
    %70 = tpu.matmul %68, %69, %cst_79 {dimension_numbers = #tpu.dot_dimension_numbers<[1], [0], [0], [1], [0, 0, 1, 1], [], []>} : vector<80x32xf32>, vector<32x64xf32>, vector<80x64xf32> -> vector<80x64xf32>
    %71 = arith.addf %63, %70 : vector<80x64xf32>
    %c21_80 = arith.constant 21 : index
    %c0_81 = arith.constant 0 : index
    %72 = vector.load %arg7[%c21_80, %c0_81] : memref<108x32xf32, #tpu.memory_space<vmem>>, vector<80x32xf32>
    %c224 = arith.constant 224 : index
    %c0_82 = arith.constant 0 : index
    %73 = vector.load %arg2[%c224, %c0_82] : memref<288x64xf32, #tpu.memory_space<vmem>>, vector<32x64xf32>
    %cst_83 = arith.constant dense<0.000000e+00> : vector<80x64xf32>
    %74 = tpu.matmul %72, %73, %cst_83 {dimension_numbers = #tpu.dot_dimension_numbers<[1], [0], [0], [1], [0, 0, 1, 1], [], []>} : vector<80x32xf32>, vector<32x64xf32>, vector<80x64xf32> -> vector<80x64xf32>
    %75 = arith.addf %67, %74 : vector<80x64xf32>
    %c22 = arith.constant 22 : index
    %c0_84 = arith.constant 0 : index
    %76 = vector.load %arg7[%c22, %c0_84] : memref<108x32xf32, #tpu.memory_space<vmem>>, vector<80x32xf32>
    %c256 = arith.constant 256 : index
    %c0_85 = arith.constant 0 : index
    %77 = vector.load %arg2[%c256, %c0_85] : memref<288x64xf32, #tpu.memory_space<vmem>>, vector<32x64xf32>
    %cst_86 = arith.constant dense<0.000000e+00> : vector<80x64xf32>
    %78 = tpu.matmul %76, %77, %cst_86 {dimension_numbers = #tpu.dot_dimension_numbers<[1], [0], [0], [1], [0, 0, 1, 1], [], []>} : vector<80x32xf32>, vector<32x64xf32>, vector<80x64xf32> -> vector<80x64xf32>
    %79 = arith.addf %71, %78 : vector<80x64xf32>
    %80 = arith.addf %79, %75 : vector<80x64xf32>
    %c0_87 = arith.constant 0 : index
    %c0_88 = arith.constant 0 : index
    %81 = vector.load %arg3[%c0_87, %c0_88] : memref<1x64xf32, #tpu.memory_space<vmem>>, vector<1x64xf32>
    %82 = vector.broadcast %81 : vector<1x64xf32> to vector<80x64xf32>
    %83 = arith.addf %80, %82 : vector<80x64xf32>
    %cst_89 = arith.constant 0.000000e+00 : f32
    %84 = vector.broadcast %cst_89 : f32 to vector<80x64xf32>
    %85 = arith.maximumf %83, %84 : vector<80x64xf32>
    %c11_90 = arith.constant 11 : index
    %c0_91 = arith.constant 0 : index
    %86 = vector.load %arg8[%c11_90, %c0_91] : memref<108x64xf32, #tpu.memory_space<vmem>>, vector<80x64xf32>
    tpu.vector_store %arg8[%c11_90, %c0_91], %85 {strides = array<i32>} : memref<108x64xf32, #tpu.memory_space<vmem>>, vector<80x64xf32>,
    %c19_92 = arith.constant 19 : index
    %c0_93 = arith.constant 0 : index
    %87 = vector.load %arg8[%c19_92, %c0_93] : memref<108x64xf32, #tpu.memory_space<vmem>>, vector<2x64xf32>
    tpu.vector_store %arg8[%c19_92, %c0_93], %41 {strides = array<i32>} : memref<108x64xf32, #tpu.memory_space<vmem>>, vector<2x64xf32>,
    %c29_94 = arith.constant 29 : index
    %c0_95 = arith.constant 0 : index
    %88 = vector.load %arg8[%c29_94, %c0_95] : memref<108x64xf32, #tpu.memory_space<vmem>>, vector<2x64xf32>
    tpu.vector_store %arg8[%c29_94, %c0_95], %41 {strides = array<i32>} : memref<108x64xf32, #tpu.memory_space<vmem>>, vector<2x64xf32>,
    %c39_96 = arith.constant 39 : index
    %c0_97 = arith.constant 0 : index
    %89 = vector.load %arg8[%c39_96, %c0_97] : memref<108x64xf32, #tpu.memory_space<vmem>>, vector<2x64xf32>
    tpu.vector_store %arg8[%c39_96, %c0_97], %41 {strides = array<i32>} : memref<108x64xf32, #tpu.memory_space<vmem>>, vector<2x64xf32>,
    %c49_98 = arith.constant 49 : index
    %c0_99 = arith.constant 0 : index
    %90 = vector.load %arg8[%c49_98, %c0_99] : memref<108x64xf32, #tpu.memory_space<vmem>>, vector<2x64xf32>
    tpu.vector_store %arg8[%c49_98, %c0_99], %41 {strides = array<i32>} : memref<108x64xf32, #tpu.memory_space<vmem>>, vector<2x64xf32>,
    %c59_100 = arith.constant 59 : index
    %c0_101 = arith.constant 0 : index
    %91 = vector.load %arg8[%c59_100, %c0_101] : memref<108x64xf32, #tpu.memory_space<vmem>>, vector<2x64xf32>
    tpu.vector_store %arg8[%c59_100, %c0_101], %41 {strides = array<i32>} : memref<108x64xf32, #tpu.memory_space<vmem>>, vector<2x64xf32>,
    %c69_102 = arith.constant 69 : index
    %c0_103 = arith.constant 0 : index
    %92 = vector.load %arg8[%c69_102, %c0_103] : memref<108x64xf32, #tpu.memory_space<vmem>>, vector<2x64xf32>
    tpu.vector_store %arg8[%c69_102, %c0_103], %41 {strides = array<i32>} : memref<108x64xf32, #tpu.memory_space<vmem>>, vector<2x64xf32>,
    %c79_104 = arith.constant 79 : index
    %c0_105 = arith.constant 0 : index
    %93 = vector.load %arg8[%c79_104, %c0_105] : memref<108x64xf32, #tpu.memory_space<vmem>>, vector<2x64xf32>
    tpu.vector_store %arg8[%c79_104, %c0_105], %41 {strides = array<i32>} : memref<108x64xf32, #tpu.memory_space<vmem>>, vector<2x64xf32>,
    %c89_106 = arith.constant 89 : index
    %c0_107 = arith.constant 0 : index
    %94 = vector.load %arg8[%c89_106, %c0_107] : memref<108x64xf32, #tpu.memory_space<vmem>>, vector<2x64xf32>
    tpu.vector_store %arg8[%c89_106, %c0_107], %41 {strides = array<i32>} : memref<108x64xf32, #tpu.memory_space<vmem>>, vector<2x64xf32>,
    %cst_108 = arith.constant 0.000000e+00 : f32
    %95 = vector.broadcast %cst_108 : f32 to vector<80x64xf32>
    %cst_109 = arith.constant 0.000000e+00 : f32
    %96 = vector.broadcast %cst_109 : f32 to vector<80x64xf32>
    %c0_110 = arith.constant 0 : index
    %c0_111 = arith.constant 0 : index
    %97 = vector.load %arg8[%c0_110, %c0_111] : memref<108x64xf32, #tpu.memory_space<vmem>>, vector<80x64xf32>
    %c0_112 = arith.constant 0 : index
    %c0_113 = arith.constant 0 : index
    %98 = vector.load %arg4[%c0_112, %c0_113] : memref<576x64xf32, #tpu.memory_space<vmem>>, vector<64x64xf32>
    %cst_114 = arith.constant dense<0.000000e+00> : vector<80x64xf32>
    %99 = tpu.matmul %97, %98, %cst_114 {dimension_numbers = #tpu.dot_dimension_numbers<[1], [0], [0], [1], [0, 0, 1, 1], [], []>} : vector<80x64xf32>, vector<64x64xf32>, vector<80x64xf32> -> vector<80x64xf32>
    %100 = arith.addf %95, %99 : vector<80x64xf32>
    %c1_115 = arith.constant 1 : index
    %c0_116 = arith.constant 0 : index
    %101 = vector.load %arg8[%c1_115, %c0_116] : memref<108x64xf32, #tpu.memory_space<vmem>>, vector<80x64xf32>
    %c64_117 = arith.constant 64 : index
    %c0_118 = arith.constant 0 : index
    %102 = vector.load %arg4[%c64_117, %c0_118] : memref<576x64xf32, #tpu.memory_space<vmem>>, vector<64x64xf32>
    %cst_119 = arith.constant dense<0.000000e+00> : vector<80x64xf32>
    %103 = tpu.matmul %101, %102, %cst_119 {dimension_numbers = #tpu.dot_dimension_numbers<[1], [0], [0], [1], [0, 0, 1, 1], [], []>} : vector<80x64xf32>, vector<64x64xf32>, vector<80x64xf32> -> vector<80x64xf32>
    %104 = arith.addf %96, %103 : vector<80x64xf32>
    %c2_120 = arith.constant 2 : index
    %c0_121 = arith.constant 0 : index
    %105 = vector.load %arg8[%c2_120, %c0_121] : memref<108x64xf32, #tpu.memory_space<vmem>>, vector<80x64xf32>
    %c128_122 = arith.constant 128 : index
    %c0_123 = arith.constant 0 : index
    %106 = vector.load %arg4[%c128_122, %c0_123] : memref<576x64xf32, #tpu.memory_space<vmem>>, vector<64x64xf32>
    %cst_124 = arith.constant dense<0.000000e+00> : vector<80x64xf32>
    %107 = tpu.matmul %105, %106, %cst_124 {dimension_numbers = #tpu.dot_dimension_numbers<[1], [0], [0], [1], [0, 0, 1, 1], [], []>} : vector<80x64xf32>, vector<64x64xf32>, vector<80x64xf32> -> vector<80x64xf32>
    %108 = arith.addf %100, %107 : vector<80x64xf32>
    %c10_125 = arith.constant 10 : index
    %c0_126 = arith.constant 0 : index
    %109 = vector.load %arg8[%c10_125, %c0_126] : memref<108x64xf32, #tpu.memory_space<vmem>>, vector<80x64xf32>
    %c192_127 = arith.constant 192 : index
    %c0_128 = arith.constant 0 : index
    %110 = vector.load %arg4[%c192_127, %c0_128] : memref<576x64xf32, #tpu.memory_space<vmem>>, vector<64x64xf32>
    %cst_129 = arith.constant dense<0.000000e+00> : vector<80x64xf32>
    %111 = tpu.matmul %109, %110, %cst_129 {dimension_numbers = #tpu.dot_dimension_numbers<[1], [0], [0], [1], [0, 0, 1, 1], [], []>} : vector<80x64xf32>, vector<64x64xf32>, vector<80x64xf32> -> vector<80x64xf32>
    %112 = arith.addf %104, %111 : vector<80x64xf32>
    %c11_130 = arith.constant 11 : index
    %c0_131 = arith.constant 0 : index
    %113 = vector.load %arg8[%c11_130, %c0_131] : memref<108x64xf32, #tpu.memory_space<vmem>>, vector<80x64xf32>
    %c256_132 = arith.constant 256 : index
    %c0_133 = arith.constant 0 : index
    %114 = vector.load %arg4[%c256_132, %c0_133] : memref<576x64xf32, #tpu.memory_space<vmem>>, vector<64x64xf32>
    %cst_134 = arith.constant dense<0.000000e+00> : vector<80x64xf32>
    %115 = tpu.matmul %113, %114, %cst_134 {dimension_numbers = #tpu.dot_dimension_numbers<[1], [0], [0], [1], [0, 0, 1, 1], [], []>} : vector<80x64xf32>, vector<64x64xf32>, vector<80x64xf32> -> vector<80x64xf32>
    %116 = arith.addf %108, %115 : vector<80x64xf32>
    %c12_135 = arith.constant 12 : index
    %c0_136 = arith.constant 0 : index
    %117 = vector.load %arg8[%c12_135, %c0_136] : memref<108x64xf32, #tpu.memory_space<vmem>>, vector<80x64xf32>
    %c320 = arith.constant 320 : index
    %c0_137 = arith.constant 0 : index
    %118 = vector.load %arg4[%c320, %c0_137] : memref<576x64xf32, #tpu.memory_space<vmem>>, vector<64x64xf32>
    %cst_138 = arith.constant dense<0.000000e+00> : vector<80x64xf32>
    %119 = tpu.matmul %117, %118, %cst_138 {dimension_numbers = #tpu.dot_dimension_numbers<[1], [0], [0], [1], [0, 0, 1, 1], [], []>} : vector<80x64xf32>, vector<64x64xf32>, vector<80x64xf32> -> vector<80x64xf32>
    %120 = arith.addf %112, %119 : vector<80x64xf32>
    %c20_139 = arith.constant 20 : index
    %c0_140 = arith.constant 0 : index
    %121 = vector.load %arg8[%c20_139, %c0_140] : memref<108x64xf32, #tpu.memory_space<vmem>>, vector<80x64xf32>
    %c384 = arith.constant 384 : index
    %c0_141 = arith.constant 0 : index
    %122 = vector.load %arg4[%c384, %c0_141] : memref<576x64xf32, #tpu.memory_space<vmem>>, vector<64x64xf32>
    %cst_142 = arith.constant dense<0.000000e+00> : vector<80x64xf32>
    %123 = tpu.matmul %121, %122, %cst_142 {dimension_numbers = #tpu.dot_dimension_numbers<[1], [0], [0], [1], [0, 0, 1, 1], [], []>} : vector<80x64xf32>, vector<64x64xf32>, vector<80x64xf32> -> vector<80x64xf32>
    %124 = arith.addf %116, %123 : vector<80x64xf32>
    %c21_143 = arith.constant 21 : index
    %c0_144 = arith.constant 0 : index
    %125 = vector.load %arg8[%c21_143, %c0_144] : memref<108x64xf32, #tpu.memory_space<vmem>>, vector<80x64xf32>
    %c448 = arith.constant 448 : index
    %c0_145 = arith.constant 0 : index
    %126 = vector.load %arg4[%c448, %c0_145] : memref<576x64xf32, #tpu.memory_space<vmem>>, vector<64x64xf32>
    %cst_146 = arith.constant dense<0.000000e+00> : vector<80x64xf32>
    %127 = tpu.matmul %125, %126, %cst_146 {dimension_numbers = #tpu.dot_dimension_numbers<[1], [0], [0], [1], [0, 0, 1, 1], [], []>} : vector<80x64xf32>, vector<64x64xf32>, vector<80x64xf32> -> vector<80x64xf32>
    %128 = arith.addf %120, %127 : vector<80x64xf32>
    %c22_147 = arith.constant 22 : index
    %c0_148 = arith.constant 0 : index
    %129 = vector.load %arg8[%c22_147, %c0_148] : memref<108x64xf32, #tpu.memory_space<vmem>>, vector<80x64xf32>
    %c512 = arith.constant 512 : index
    %c0_149 = arith.constant 0 : index
    %130 = vector.load %arg4[%c512, %c0_149] : memref<576x64xf32, #tpu.memory_space<vmem>>, vector<64x64xf32>
    %cst_150 = arith.constant dense<0.000000e+00> : vector<80x64xf32>
    %131 = tpu.matmul %129, %130, %cst_150 {dimension_numbers = #tpu.dot_dimension_numbers<[1], [0], [0], [1], [0, 0, 1, 1], [], []>} : vector<80x64xf32>, vector<64x64xf32>, vector<80x64xf32> -> vector<80x64xf32>
    %132 = arith.addf %124, %131 : vector<80x64xf32>
    %133 = arith.addf %132, %128 : vector<80x64xf32>
    %c0_151 = arith.constant 0 : index
    %c0_152 = arith.constant 0 : index
    %134 = vector.load %arg5[%c0_151, %c0_152] : memref<1x64xf32, #tpu.memory_space<vmem>>, vector<1x64xf32>
    %135 = vector.broadcast %134 : vector<1x64xf32> to vector<80x64xf32>
    %136 = arith.addf %133, %135 : vector<80x64xf32>
    %cst_153 = arith.constant 0.000000e+00 : f32
    %137 = vector.broadcast %cst_153 : f32 to vector<80x64xf32>
    %138 = arith.maximumf %136, %137 : vector<80x64xf32>
    %139 = vector.extract_strided_slice %138 {offsets = [0, 0], sizes = [8, 64], strides = [1, 1]} : vector<80x64xf32> to vector<8x64xf32>
    %c0_154 = arith.constant 0 : index
    %c0_155 = arith.constant 0 : index
    %c0_156 = arith.constant 0 : index
    %c0_157 = arith.constant 0 : index
    %140 = vector.load %arg6[%c0_154, %c0_155, %c0_156, %c0_157] : memref<1x8x8x64xf32, #tpu.memory_space<vmem>>, vector<1x1x8x64xf32>
    %141 = vector.shape_cast %140 : vector<1x1x8x64xf32> to vector<8x64xf32>
    %142 = vector.shape_cast %139 : vector<8x64xf32> to vector<1x1x8x64xf32>
    tpu.vector_store %arg6[%c0_154, %c0_155, %c0_156, %c0_157], %142 {strides = array<i32>} : memref<1x8x8x64xf32, #tpu.memory_space<vmem>>, vector<1x1x8x64xf32>,
    %143 = vector.extract_strided_slice %138 {offsets = [10, 0], sizes = [8, 64], strides = [1, 1]} : vector<80x64xf32> to vector<8x64xf32>
    %c0_158 = arith.constant 0 : index
    %c1_159 = arith.constant 1 : index
    %c0_160 = arith.constant 0 : index
    %c0_161 = arith.constant 0 : index
    %144 = vector.load %arg6[%c0_158, %c1_159, %c0_160, %c0_161] : memref<1x8x8x64xf32, #tpu.memory_space<vmem>>, vector<1x1x8x64xf32>
    %145 = vector.shape_cast %144 : vector<1x1x8x64xf32> to vector<8x64xf32>
    %146 = vector.shape_cast %143 : vector<8x64xf32> to vector<1x1x8x64xf32>
    tpu.vector_store %arg6[%c0_158, %c1_159, %c0_160, %c0_161], %146 {strides = array<i32>} : memref<1x8x8x64xf32, #tpu.memory_space<vmem>>, vector<1x1x8x64xf32>,
    %147 = vector.extract_strided_slice %138 {offsets = [20, 0], sizes = [8, 64], strides = [1, 1]} : vector<80x64xf32> to vector<8x64xf32>
    %c0_162 = arith.constant 0 : index
    %c2_163 = arith.constant 2 : index
    %c0_164 = arith.constant 0 : index
    %c0_165 = arith.constant 0 : index
    %148 = vector.load %arg6[%c0_162, %c2_163, %c0_164, %c0_165] : memref<1x8x8x64xf32, #tpu.memory_space<vmem>>, vector<1x1x8x64xf32>
    %149 = vector.shape_cast %148 : vector<1x1x8x64xf32> to vector<8x64xf32>
    %150 = vector.shape_cast %147 : vector<8x64xf32> to vector<1x1x8x64xf32>
    tpu.vector_store %arg6[%c0_162, %c2_163, %c0_164, %c0_165], %150 {strides = array<i32>} : memref<1x8x8x64xf32, #tpu.memory_space<vmem>>, vector<1x1x8x64xf32>,
    %151 = vector.extract_strided_slice %138 {offsets = [30, 0], sizes = [8, 64], strides = [1, 1]} : vector<80x64xf32> to vector<8x64xf32>
    %c0_166 = arith.constant 0 : index
    %c3_167 = arith.constant 3 : index
    %c0_168 = arith.constant 0 : index
    %c0_169 = arith.constant 0 : index
    %152 = vector.load %arg6[%c0_166, %c3_167, %c0_168, %c0_169] : memref<1x8x8x64xf32, #tpu.memory_space<vmem>>, vector<1x1x8x64xf32>
    %153 = vector.shape_cast %152 : vector<1x1x8x64xf32> to vector<8x64xf32>
    %154 = vector.shape_cast %151 : vector<8x64xf32> to vector<1x1x8x64xf32>
    tpu.vector_store %arg6[%c0_166, %c3_167, %c0_168, %c0_169], %154 {strides = array<i32>} : memref<1x8x8x64xf32, #tpu.memory_space<vmem>>, vector<1x1x8x64xf32>,
    %155 = vector.extract_strided_slice %138 {offsets = [40, 0], sizes = [8, 64], strides = [1, 1]} : vector<80x64xf32> to vector<8x64xf32>
    %c0_170 = arith.constant 0 : index
    %c4_171 = arith.constant 4 : index
    %c0_172 = arith.constant 0 : index
    %c0_173 = arith.constant 0 : index
    %156 = vector.load %arg6[%c0_170, %c4_171, %c0_172, %c0_173] : memref<1x8x8x64xf32, #tpu.memory_space<vmem>>, vector<1x1x8x64xf32>
    %157 = vector.shape_cast %156 : vector<1x1x8x64xf32> to vector<8x64xf32>
    %158 = vector.shape_cast %155 : vector<8x64xf32> to vector<1x1x8x64xf32>
    tpu.vector_store %arg6[%c0_170, %c4_171, %c0_172, %c0_173], %158 {strides = array<i32>} : memref<1x8x8x64xf32, #tpu.memory_space<vmem>>, vector<1x1x8x64xf32>,
    %159 = vector.extract_strided_slice %138 {offsets = [50, 0], sizes = [8, 64], strides = [1, 1]} : vector<80x64xf32> to vector<8x64xf32>
    %c0_174 = arith.constant 0 : index
    %c5_175 = arith.constant 5 : index
    %c0_176 = arith.constant 0 : index
    %c0_177 = arith.constant 0 : index
    %160 = vector.load %arg6[%c0_174, %c5_175, %c0_176, %c0_177] : memref<1x8x8x64xf32, #tpu.memory_space<vmem>>, vector<1x1x8x64xf32>
    %161 = vector.shape_cast %160 : vector<1x1x8x64xf32> to vector<8x64xf32>
    %162 = vector.shape_cast %159 : vector<8x64xf32> to vector<1x1x8x64xf32>
    tpu.vector_store %arg6[%c0_174, %c5_175, %c0_176, %c0_177], %162 {strides = array<i32>} : memref<1x8x8x64xf32, #tpu.memory_space<vmem>>, vector<1x1x8x64xf32>,
    %163 = vector.extract_strided_slice %138 {offsets = [60, 0], sizes = [8, 64], strides = [1, 1]} : vector<80x64xf32> to vector<8x64xf32>
    %c0_178 = arith.constant 0 : index
    %c6_179 = arith.constant 6 : index
    %c0_180 = arith.constant 0 : index
    %c0_181 = arith.constant 0 : index
    %164 = vector.load %arg6[%c0_178, %c6_179, %c0_180, %c0_181] : memref<1x8x8x64xf32, #tpu.memory_space<vmem>>, vector<1x1x8x64xf32>
    %165 = vector.shape_cast %164 : vector<1x1x8x64xf32> to vector<8x64xf32>
    %166 = vector.shape_cast %163 : vector<8x64xf32> to vector<1x1x8x64xf32>
    tpu.vector_store %arg6[%c0_178, %c6_179, %c0_180, %c0_181], %166 {strides = array<i32>} : memref<1x8x8x64xf32, #tpu.memory_space<vmem>>, vector<1x1x8x64xf32>,
    %167 = vector.extract_strided_slice %138 {offsets = [70, 0], sizes = [8, 64], strides = [1, 1]} : vector<80x64xf32> to vector<8x64xf32>
    %c0_182 = arith.constant 0 : index
    %c7_183 = arith.constant 7 : index
    %c0_184 = arith.constant 0 : index
    %c0_185 = arith.constant 0 : index
    %168 = vector.load %arg6[%c0_182, %c7_183, %c0_184, %c0_185] : memref<1x8x8x64xf32, #tpu.memory_space<vmem>>, vector<1x1x8x64xf32>
    %169 = vector.shape_cast %168 : vector<1x1x8x64xf32> to vector<8x64xf32>
    %170 = vector.shape_cast %167 : vector<8x64xf32> to vector<1x1x8x64xf32>
    tpu.vector_store %arg6[%c0_182, %c7_183, %c0_184, %c0_185], %170 {strides = array<i32>} : memref<1x8x8x64xf32, #tpu.memory_space<vmem>>, vector<1x1x8x64xf32>,
    return
  }
  func.func @transform_0(%arg0: i32) -> (i32, i32, i32, i32) {
    %c0_i32 = arith.constant 0 : i32
    %c0_i32_0 = arith.constant 0 : i32
    %c0_i32_1 = arith.constant 0 : i32
    %c0_i32_2 = arith.constant 0 : i32
    return %arg0, %c0_i32, %c0_i32_0, %c0_i32_1 : i32, i32, i32, i32
  }
  func.func @transform_1(%arg0: i32) -> (i32, i32) {
    %c0_i32 = arith.constant 0 : i32
    %c0_i32_0 = arith.constant 0 : i32
    %c0_i32_1 = arith.constant 0 : i32
    return %c0_i32, %c0_i32_0 : i32, i32
  }
  func.func @transform_2(%arg0: i32) -> (i32, i32) {
    %c0_i32 = arith.constant 0 : i32
    %c0_i32_0 = arith.constant 0 : i32
    %c0_i32_1 = arith.constant 0 : i32
    return %c0_i32, %c0_i32_0 : i32, i32
  }
  func.func @transform_3(%arg0: i32) -> (i32, i32) {
    %c0_i32 = arith.constant 0 : i32
    %c0_i32_0 = arith.constant 0 : i32
    %c0_i32_1 = arith.constant 0 : i32
    return %c0_i32, %c0_i32_0 : i32, i32
  }
  func.func @transform_4(%arg0: i32) -> (i32, i32) {
    %c0_i32 = arith.constant 0 : i32
    %c0_i32_0 = arith.constant 0 : i32
    %c0_i32_1 = arith.constant 0 : i32
    return %c0_i32, %c0_i32_0 : i32, i32
  }
  func.func @transform_5(%arg0: i32) -> (i32, i32, i32, i32) {
    %c0_i32 = arith.constant 0 : i32
    %c0_i32_0 = arith.constant 0 : i32
    %c0_i32_1 = arith.constant 0 : i32
    %c0_i32_2 = arith.constant 0 : i32
    return %arg0, %c0_i32, %c0_i32_0, %c0_i32_1 : i32, i32, i32, i32
  }
}

</mosaic_0001>

<bundles_post_ra>
// kernel: tile.13
= control target key start
LH: loop header
LB: loop body
LE: loop exit
PB: predicated region body
PF: predicated region fallthrough
CT: control target
= control target key end

     0   :  { %s22_s0 = inlined_call_operand.vmem [shape: f32[8], index: 0, kind: input, shape index: {}]   ;;  %s23_s1 = inlined_call_operand.vmem [shape: f32[8,8], index: 1, kind: output, shape index: {}]  }
   0x1   :  { %v4_v0 = vld [vmem:[%s22_s0] ss:$0 sm:$0xff] }
   0x2   :  { %5 = vst [vmem:[%s23_s1] sm:$0xff] %v4_v0 }

// kernel: tile.14
= control target key start
LH: loop header
LB: loop body
LE: loop exit
PB: predicated region body
PF: predicated region fallthrough
CT: control target
= control target key end

     0   :  { %s69_s10 = smov 56   ;;  %s70_s11 = smov 40   ;;  %vm3_vm0 = vcmask 64512   ;;  %vm9_vm1 = vcmask 523712   ;;  %vm15_vm2 = vcmask 458112   ;;  %vm21_vm3 = vcmask 392512   ;;  %s113_s0 = inlined_call_operand.vmem [shape: f32[8,8], index: 0, kind: input, shape index: {}]   ;;  %s114_s1 = inlined_call_operand.vmem [shape: f32[1,64], index: 1, kind: output, shape index: {}]  }
   0x1   :  { %v55_v0 = vld [vmem:[%s113_s0 + $0x7] sm:$0x1]   ;;  %v57_v1 = vld [vmem:[%s113_s0 + $0x5] sm:$0x1]   ;;  %v56_v2 = vld [vmem:[%s113_s0 + $0x6] sm:$0x1]  }
   0x2   :  { %7 = vrot.lane.b32.xlu0 %v55_v0, %s69_s10  ;;  %19 = vrot.lane.b32.xlu1 %v57_v1, %s70_s11  ;;  %v58_v3 = vld [vmem:[%s113_s0 + $0x4] sm:$0x1]   ;;  %v2_v4 = vld [vmem:[%s113_s0] sm:$0x1]   ;;  %s71_s18 = smov 48   ;;  %s72_s19 = smov 32  }
   0x3   :  { %4 = vst.msk [vmem:[#allocation0] sm:$0x1] %vm3_vm0, %v2_v4   ;;  %v59_v5 = vld [vmem:[%s113_s0 + $0x3] sm:$0x1]   ;;  %v60_v6 = vld [vmem:[%s113_s0 + $0x2] sm:$0x1]  }
   0x4   :  { %s73_s24 = smov 24   ;;  %s74_s25 = smov 16   ;;  %v61_v7 = vld [vmem:[%s113_s0 + $0x1] sm:$0x1]   ;;  %vm27_vm4 = vcmask 326912   ;;  %vm33_vm5 = vcmask 261312  }
   0x5   :  { %s75_s0 = smov 8   ;;  %vm39_vm6 = vcmask 195712   ;;  %vm45_vm7 = vcmask 130112  }
   0x6   :  { %13 = vrot.lane.b32.xlu0 %v56_v2, %s71_s18  ;;  %25 = vrot.lane.b32.xlu1 %v58_v3, %s72_s19 }
   0xa   :  { %31 = vrot.lane.b32.xlu0 %v59_v5, %s73_s24  ;;  %37 = vrot.lane.b32.xlu1 %v60_v6, %s74_s25 }
   0xe   :  { %43 = vrot.lane.b32.xlu0 %v61_v7, %s75_s0 }
  0x74   :  { %v8_v8 = vpop.permute.xlu0 %7   ;;  %v20_v9 = vpop.permute.xlu1 %19  }
  0x75   :  { %10 = vst.msk [vmem:[#allocation0] sm:$0x1] %vm9_vm1, %v8_v8  }
  0x78   :  { %v14_v10 = vpop.permute.xlu0 %13   ;;  %v26_v11 = vpop.permute.xlu1 %25  }
  0x79   :  { %16 = vst.msk [vmem:[#allocation0] sm:$0x1] %vm15_vm2, %v14_v10  }
  0x7a   :  { %22 = vst.msk [vmem:[#allocation0] sm:$0x1] %vm21_vm3, %v20_v9  }
  0x7b   :  { %28 = vst.msk [vmem:[#allocation0] sm:$0x1] %vm27_vm4, %v26_v11  }
  0x7c   :  { %v32_v12 = vpop.permute.xlu0 %31   ;;  %v38_v13 = vpop.permute.xlu1 %37  }
  0x7d   :  { %34 = vst.msk [vmem:[#allocation0] sm:$0x1] %vm33_vm5, %v32_v12  }
  0x7e   :  { %40 = vst.msk [vmem:[#allocation0] sm:$0x1] %vm39_vm6, %v38_v13  }
  0x80   :  { %v44_v14 = vpop.permute.xlu0 %43  }
  0x81   :  { %46 = vst.msk [vmem:[#allocation0] sm:$0x1] %vm45_vm7, %v44_v14  }
  0x88   :  { %v51_v15 = vld [vmem:[#allocation0] sm:$0x1] }
  0x89   :  { %54 = vst [vmem:[%s114_s1] sm:$0x1] %v51_v15 }

// kernel: conv_block_forward.1
= control target key start
LH: loop header
LB: loop body
LE: loop exit
PB: predicated region body
PF: predicated region fallthrough
CT: control target
= control target key end

     0   :  { %s4482_s18 = smov 0   ;;  %s5566_s0 = inlined_call_operand.vmem [shape: f32[2,8,8,32], index: 0, kind: input, shape index: {}]   ;;  %s5567_s1 = inlined_call_operand.vmem [shape: f32[288,64], index: 1, kind: input, shape index: {}]   ;;  %s5568_s2 = inlined_call_operand.vmem [shape: f32[1,64], index: 2, kind: input, shape index: {}]   ;;  %s5569_s3 = inlined_call_operand.vmem [shape: f32[576,64], index: 3, kind: input, shape index: {}]   ;;  %s5570_s4 = inlined_call_operand.vmem [shape: f32[1,64], index: 4, kind: input, shape index: {}]   ;;  %s5571_s5 = inlined_call_operand.vmem [shape: f32[2,8,8,64], index: 5, kind: output, shape index: {}]  }
   0x1 LB: > { %s3445_s19 = sadd.s32 4294967295, %s4449_s18   ;;  %p3449_p0 = scmp.ge.s32.totalorder %s4449_s18, 1  ;;  %s4449_s18 = sphi %s4482_s18, %s15_s18  }
   0x2   : > { %p187_p1 = scmp.lt.s32.totalorder %s4449_s18, 3 }
   0x4   : > { %p188_p2 = pnand %p3449_p0, %p187_p1 }
   0x6   : > { %191 = sbr.rel (%p188_p2) target bundleno = 639 (0x27f), region = 40 }
   0xb   : > { %v314_v0 = vld [vmem:[%s5567_s1 + $0x58] sm:$0xff]  ;;  %v313_v2 = vld [vmem:[%s5567_s1 + $0x50] sm:$0xff]  ;;  %vm225_vm0 = vcmask 261120   ;;  %vm227_vm1 = vcmask 256000   ;;  %v5572_v4 = vmov 0.0   ;;  %p215_p3 = scmp.lt.s32.totalorder %s3445_s19, 1 }
   0xc   : > { %v286_v1 = vld [vmem:[%s5567_s1 + $0x18] sm:$0xff]  ;;  %3948 = vmatprep.subr.mxu0 %v314_v0  ;;  %v285_v3 = vld [vmem:[%s5567_s1 + $0x10] sm:$0xff]  ;;  %226 = vst.msk [vmem:[#allocation2] sm:$0xff] %vm225_vm0, %v5572_v4  ;;  %229 = vst.msk [vmem:[#allocation2 + $0x5b] sm:$0xff] %vm225_vm0, %v5572_v4  ;;  %vm243_vm2 = vcmask 254976   ;;  %vm233_vm3 = vcmask 523264  }
   0xd   : > { %3971 = vmatprep.subr.mxu1 %v286_v1  ;;  %228 = vst.msk [vmem:[#allocation2 + $0x8] sm:$0x7] %vm227_vm1, %v5572_v4  ;;  %3949 = vmatpush3.msra.mxu0 %v314_v0  ;;  %v312_v5 = vld [vmem:[%s5567_s1 + $0x48] sm:$0xff]  ;;  %s5646_s19 = smov (!%p215_p3, %s3445_s19), 1  ;;  %v311_v7 = vld [vmem:[%s5567_s1 + $0x40] sm:$0xff]  ;;  %v618_v9 = vld [vmem:[%s5567_s1 + $0x78] sm:$0xff] }
   0xe   : > { %230 = vst.msk [vmem:[#allocation2 + $0x63] sm:$0xff] %vm225_vm0, %v5572_v4  ;;  %3972 = vmatpush3.msra.mxu1 %v286_v1  ;;  %v284_v6 = vld [vmem:[%s5567_s1 + $0x8] sm:$0xff]  ;;  %3950 = vmatprep.subr.mxu0 %v313_v2  ;;  %v283_v8 = vld [vmem:[%s5567_s1] sm:$0xff]  ;;  %s3658_s11 = sshll.u32 %s5646_s19, 6  ;;  %v300_v10 = vld [vmem:[%s5567_s1 + $0x38] sm:$0xff]  ;;  %vm235_vm4 = vcmask 518144  }
   0xf   : > { %3973 = vmatprep.subr.mxu1 %v285_v3  ;;  %244 = vst.msk [vmem:[#allocation2 + $0x13] sm:$0x3] %vm243_vm2, %v5572_v4  ;;  %248 = vst.msk [vmem:[#allocation2 + $0x1d] sm:$0x3] %vm243_vm2, %v5572_v4  ;;  %3951 = vmatpush3.msra.mxu0 %v313_v2  ;;  %s219_s16 = scalar_lea.vmem %s5566_s0, %s3658_s11  ;;  %v617_v21 = vld [vmem:[%s5567_s1 + $0x70] sm:$0xff]  ;;  %v616_v30 = vld [vmem:[%s5567_s1 + $0x68] sm:$0xff]  ;;  %s5501_s25 = scalar_lea.vmem %s5571_s5, %s3658_s11 }
  0x10   : > { %252 = vst.msk [vmem:[#allocation2 + $0x27] sm:$0x3] %vm243_vm2, %v5572_v4  ;;  %256 = vst.msk [vmem:[#allocation2 + $0x31] sm:$0x3] %vm243_vm2, %v5572_v4  ;;  %3974 = vmatpush3.msra.mxu1 %v285_v3  ;;  %3952 = vmatprep.subr.mxu0 %v312_v5  ;;  %v241_v11 = vld [vmem:[%s219_s16] sm:$0xff]  ;;  %v3454_v12 = vld [vmem:[%s219_s16 + $0x8] sm:$0xff] }
  0x11   : > { %260 = vst.msk [vmem:[#allocation2 + $0x3b] sm:$0x3] %vm243_vm2, %v5572_v4  ;;  %264 = vst.msk [vmem:[#allocation2 + $0x45] sm:$0x3] %vm243_vm2, %v5572_v4  ;;  %3975 = vmatprep.subr.mxu1 %v284_v6  ;;  %3953 = vmatpush3.msra.mxu0 %v312_v5  ;;  %v3455_v13 = vld [vmem:[%s219_s16 + $0x10] sm:$0xff]  ;;  %v3456_v16 = vld [vmem:[%s219_s16 + $0x18] sm:$0xff] }
  0x12   : > { %268 = vst.msk [vmem:[#allocation2 + $0x4f] sm:$0x3] %vm243_vm2, %v5572_v4  ;;  %272 = vst.msk [vmem:[#allocation2 + $0x59] sm:$0x3] %vm243_vm2, %v5572_v4  ;;  %3976 = vmatpush3.msra.mxu1 %v284_v6  ;;  %3954 = vmatprep.subr.mxu0 %v311_v7  ;;  %v3457_v17 = vld [vmem:[%s219_s16 + $0x20] sm:$0xff]  ;;  %v3458_v18 = vld [vmem:[%s219_s16 + $0x28] sm:$0xff] }
  0x13   : > { %3977 = vmatprep.subr.mxu1 %v283_v8  ;;  %3955 = vmatpush3.msra.mxu0 %v311_v7  ;;  %v273_v15 = vld [vmem:[#allocation2] sm:$0xff]  ;;  %242 = vst.msk [vmem:[#allocation2 + $0xb] sm:$0xff] %vm225_vm0, %v241_v11  ;;  %247 = vst.msk [vmem:[#allocation2 + $0x15] sm:$0xff] %vm225_vm0, %v3454_v12  ;;  %v3459_v19 = vld [vmem:[%s219_s16 + $0x30] sm:$0xff]  ;;  %vm1801_vm5 = vcmask 517120   ;;  %vm3366_vm6 = vcmask 523266  }
  0x14   : > { %v301_v14 = vld [vmem:[#allocation2 + $0x2] sm:$0xff]  ;;  %3978 = vmatpush3.msra.mxu1 %v283_v8  ;;  %251 = vst.msk [vmem:[#allocation2 + $0x1f] sm:$0xff] %vm225_vm0, %v3455_v13  ;;  %3979 = vmatprep.mubr.msk.f32.mxu1 %vm225_vm0, %v273_v15  ;;  %255 = vst.msk [vmem:[#allocation2 + $0x29] sm:$0xff] %vm225_vm0, %v3456_v16  ;;  %v3460_v20 = vld [vmem:[%s219_s16 + $0x38] sm:$0xff]  ;;  %vm3372_vm7 = vcmask 519168   ;;  %vm3375_vm8 = vcmask 523270  }
  0x15   : > { %3956 = vmatprep.mubr.msk.f32.mxu0 %vm225_vm0, %v301_v14  ;;  %3994 = vmatprep.subr.mxu0 %v618_v9  ;;  %259 = vst.msk [vmem:[#allocation2 + $0x33] sm:$0xff] %vm225_vm0, %v3457_v17  ;;  %263 = vst.msk [vmem:[#allocation2 + $0x3d] sm:$0xff] %vm225_vm0, %v3458_v18  ;;  %v299_v31 = vld [vmem:[%s5567_s1 + $0x30] sm:$0xff]  ;;  %v615_v36 = vld [vmem:[%s5567_s1 + $0x60] sm:$0xff]  ;;  %vm3370_vm9 = vcmask 523268   ;;  %vm3377_vm10 = vcmask 521216  }
  0x16   : > { %4017 = vmatprep.subr.mxu1 %v300_v10  ;;  %267 = vst.msk [vmem:[#allocation2 + $0x47] sm:$0xff] %vm225_vm0, %v3459_v19  ;;  %271 = vst.msk [vmem:[#allocation2 + $0x51] sm:$0xff] %vm225_vm0, %v3460_v20  ;;  %v298_v37 = vld [vmem:[%s5567_s1 + $0x28] sm:$0xff]  ;;  %v297_v42 = vld [vmem:[%s5567_s1 + $0x20] sm:$0xff] }
  0x17   : > { %v922_v43 = vld [vmem:[%s5567_s1 + $0x98] sm:$0xff]  ;;  %v287_v46 = vld [vmem:[#allocation2 + $0x1] sm:$0xff]  ;;  %v921_v50 = vld [vmem:[%s5567_s1 + $0x90] sm:$0xff]  ;;  %234 = vst.msk [vmem:[#allocation3] sm:$0xff] %vm233_vm3, %v5572_v4 }
  0x18   : > { %v1091_v47 = vld [vmem:[%s5567_s1 + $0xb8] sm:$0xff]  ;;  %v920_v53 = vld [vmem:[%s5567_s1 + $0x88] sm:$0xff]  ;;  %v1090_v54 = vld [vmem:[%s5567_s1 + $0xb0] sm:$0xff]  ;;  %237 = vst.msk [vmem:[#allocation3 + $0x5b] sm:$0xff] %vm233_vm3, %v5572_v4 }
  0x19   : > { %v919_v57 = vld [vmem:[%s5567_s1 + $0x80] sm:$0xff]  ;;  %v1089_v58 = vld [vmem:[%s5567_s1 + $0xa8] sm:$0xff]  ;;  %v1260_v62 = vld [vmem:[%s5567_s1 + $0xd8] sm:$0xff]  ;;  %238 = vst.msk [vmem:[#allocation3 + $0x63] sm:$0xff] %vm233_vm3, %v5572_v4 }
  0x1a   : > { %v302_v22 = vld [vmem:[#allocation2 + $0xa] sm:$0xff]  ;;  %v4556_v24 = vld [vmem:[#allocation2 + $0x12] sm:$0xff]  ;;  %v1088_v61 = vld [vmem:[%s5567_s1 + $0xa0] sm:$0xff]  ;;  %236 = vst.msk [vmem:[#allocation3 + $0x8] sm:$0x7] %vm235_vm4, %v5572_v4 }
  0x1b   : > { %v274_v23 = vld [vmem:[#allocation2 + $0x8] sm:$0xff]  ;;  %3957 = vmatmul.mubr.msk.f32.vlgmr.msra.gmra.mxu0 %vm225_vm0, %v302_v22  ;;  %v275_v25 = vld [vmem:[#allocation2 + $0x10] sm:$0xff]  ;;  %v304_v26 = vld [vmem:[#allocation2 + $0x1a] sm:$0xff] }
  0x1c   : > { %3980 = vmatmul.mubr.msk.f32.vlgmr.msra.gmra.mxu1 %vm225_vm0, %v274_v23  ;;  %3995 = vmatpush3.msra.mxu0 %v618_v9  ;;  %v276_v27 = vld [vmem:[#allocation2 + $0x18] sm:$0xff]  ;;  %v4563_v28 = vld [vmem:[#allocation2 + $0x22] sm:$0xff]  ;;  %v306_v32 = vld [vmem:[#allocation2 + $0x2a] sm:$0xff] }
  0x1d   : > { %3959 = vmatprep.mubr.msk.f32.mxu0 %vm225_vm0, %v4556_v24  ;;  %3982 = vmatprep.mubr.msk.f32.mxu1 %vm225_vm0, %v275_v25  ;;  %v277_v29 = vld [vmem:[#allocation2 + $0x20] sm:$0xff]  ;;  %v278_v33 = vld [vmem:[#allocation2 + $0x28] sm:$0xff]  ;;  %v4576_v34 = vld [vmem:[#allocation2 + $0x32] sm:$0xff] }
  0x1e   : > { %3996 = vmatprep.subr.mxu0 %v617_v21  ;;  %4018 = vmatpush3.msra.mxu1 %v300_v10  ;;  %v279_v35 = vld [vmem:[#allocation2 + $0x30] sm:$0xff]  ;;  %v308_v38 = vld [vmem:[#allocation2 + $0x3a] sm:$0xff]  ;;  %v309_v40 = vld [vmem:[#allocation2 + $0x42] sm:$0xff] }
  0x1f   : > { %3997 = vmatpush3.msra.mxu0 %v617_v21  ;;  %4019 = vmatprep.subr.mxu1 %v299_v31  ;;  %v280_v39 = vld [vmem:[#allocation2 + $0x38] sm:$0xff]  ;;  %v281_v41 = vld [vmem:[#allocation2 + $0x40] sm:$0xff]  ;;  %v310_v44 = vld [vmem:[#allocation2 + $0x4a] sm:$0xff] }
  0x20   : > { %3960 = vmatmul.mubr.msk.f32.gmra.mxu0 %vm225_vm0, %v304_v26  ;;  %3983 = vmatmul.mubr.msk.f32.gmra.mxu1 %vm225_vm0, %v276_v27  ;;  %v282_v45 = vld [vmem:[#allocation2 + $0x48] sm:$0xff]  ;;  %v289_v49 = vld [vmem:[#allocation2 + $0x11] sm:$0xff]  ;;  %v290_v51 = vld [vmem:[#allocation2 + $0x19] sm:$0xff] }
  0x21   : > { %3962 = vmatprep.mubr.msk.f32.mxu0 %vm225_vm0, %v4563_v28  ;;  %3985 = vmatprep.mubr.msk.f32.mxu1 %vm225_vm0, %v277_v29  ;;  %v288_v48 = vld [vmem:[#allocation2 + $0x9] sm:$0xff]  ;;  %v291_v52 = vld [vmem:[#allocation2 + $0x21] sm:$0xff]  ;;  %v293_v56 = vld [vmem:[#allocation2 + $0x31] sm:$0xff] }
  0x22   : > { %3998 = vmatprep.subr.mxu0 %v616_v30  ;;  %4020 = vmatpush3.msra.mxu1 %v299_v31  ;;  %v292_v55 = vld [vmem:[#allocation2 + $0x29] sm:$0xff]  ;;  %v294_v59 = vld [vmem:[#allocation2 + $0x39] sm:$0xff]  ;;  %v295_v60 = vld [vmem:[#allocation2 + $0x41] sm:$0xff] }
  0x23   : > { %3999 = vmatpush3.msra.mxu0 %v616_v30  ;;  %4021 = vmatprep.subr.mxu1 %v298_v37  ;;  %v614_v63 = vld [vmem:[#allocation2 + $0x52] sm:$0xff]  ;;  %v296_v0 = vld [vmem:[#allocation2 + $0x49] sm:$0xff]  ;;  %v911_v7 = vld [vmem:[#allocation2 + $0x1b] sm:$0xff] }
  0x24   : > { %3963 = vmatmul.mubr.msk.f32.gmra.mxu0 %vm225_vm0, %v306_v32  ;;  %3986 = vmatmul.mubr.msk.f32.gmra.mxu1 %vm225_vm0, %v278_v33  ;;  %v909_v1 = vld [vmem:[#allocation2 + $0xb] sm:$0xff]  ;;  %v1429_v3 = vld [vmem:[%s5567_s1 + $0xf8] sm:$0xff]  ;;  %v912_v10 = vld [vmem:[#allocation2 + $0x23] sm:$0xff] }
  0x25   : > { %3965 = vmatprep.mubr.msk.f32.mxu0 %vm225_vm0, %v4576_v34  ;;  %3988 = vmatprep.mubr.msk.f32.mxu1 %vm225_vm0, %v279_v35  ;;  %v1078_v2 = vld [vmem:[#allocation2 + $0xc] sm:$0xff]  ;;  %v1079_v6 = vld [vmem:[#allocation2 + $0x14] sm:$0xff]  ;;  %v1080_v8 = vld [vmem:[#allocation2 + $0x1c] sm:$0xff] }
  0x26   : > { %4000 = vmatprep.subr.mxu0 %v615_v36  ;;  %4022 = vmatpush3.msra.mxu1 %v298_v37  ;;  %v910_v5 = vld [vmem:[#allocation2 + $0x13] sm:$0xff]  ;;  %v1081_v11 = vld [vmem:[#allocation2 + $0x24] sm:$0xff]  ;;  %v915_v18 = vld [vmem:[#allocation2 + $0x3b] sm:$0xff] }
  0x27   : > { %4001 = vmatpush3.msra.mxu0 %v615_v36  ;;  %4023 = vmatprep.subr.mxu1 %v297_v42  ;;  %v1259_v9 = vld [vmem:[%s5567_s1 + $0xd0] sm:$0xff]  ;;  %v1258_v14 = vld [vmem:[%s5567_s1 + $0xc8] sm:$0xff]  ;;  %v1084_v19 = vld [vmem:[#allocation2 + $0x3c] sm:$0xff] }
  0x28   : > { %3966 = vmatmul.mubr.msk.f32.gmra.mxu0 %vm225_vm0, %v308_v38  ;;  %3989 = vmatmul.mubr.msk.f32.gmra.mxu1 %vm225_vm0, %v280_v39  ;;  %v913_v12 = vld [vmem:[#allocation2 + $0x2b] sm:$0xff]  ;;  %v914_v16 = vld [vmem:[#allocation2 + $0x33] sm:$0xff]  ;;  %v1257_v20 = vld [vmem:[%s5567_s1 + $0xc0] sm:$0xff] }
  0x29   : > { %3968 = vmatprep.mubr.msk.f32.mxu0 %vm225_vm0, %v309_v40  ;;  %3991 = vmatprep.mubr.msk.f32.mxu1 %vm225_vm0, %v281_v41  ;;  %v1082_v13 = vld [vmem:[#allocation2 + $0x2c] sm:$0xff]  ;;  %v1083_v17 = vld [vmem:[#allocation2 + $0x34] sm:$0xff]  ;;  %v1085_v23 = vld [vmem:[#allocation2 + $0x44] sm:$0xff] }
  0x2a   : > { %4040 = vmatprep.subr.mxu0 %v922_v43  ;;  %4024 = vmatpush3.msra.mxu1 %v297_v42  ;;  %v1428_v15 = vld [vmem:[%s5567_s1 + $0xf0] sm:$0xff]  ;;  %v1427_v21 = vld [vmem:[%s5567_s1 + $0xe8] sm:$0xff]  ;;  %v1598_v27 = vld [vmem:[%s5567_s1 + $0x118] sm:$0xff] }
  0x2b   : > { %4063 = vmatprep.subr.mxu1 %v1091_v47  ;;  %v1086_v25 = vld [vmem:[#allocation2 + $0x4c] sm:$0xff]  ;;  %v1087_v29 = vld [vmem:[#allocation2 + $0x54] sm:$0xff]  ;;  %v1417_v31 = vld [vmem:[#allocation2 + $0x1d] sm:$0xff] }
  0x2c   : > { %3969 = vmatmul.mubr.msk.f32.gmra.mxu0 %vm225_vm0, %v310_v44  ;;  %3992 = vmatmul.mubr.msk.f32.gmra.mxu1 %vm225_vm0, %v282_v45  ;;  %v1416_v30 = vld [vmem:[#allocation2 + $0x15] sm:$0xff]  ;;  %v1596_v36 = vld [vmem:[%s5567_s1 + $0x108] sm:$0xff]  ;;  %v1421_v37 = vld [vmem:[#allocation2 + $0x3d] sm:$0xff] }
  0x2d   : > { %4002 = vmatprep.mubr.msk.f32.mxu0 %vm225_vm0, %v302_v22  ;;  %4025 = vmatprep.mubr.msk.f32.mxu1 %vm225_vm0, %v287_v46  ;;  %v916_v22 = vld [vmem:[#allocation2 + $0x43] sm:$0xff]  ;;  %v1597_v33 = vld [vmem:[%s5567_s1 + $0x110] sm:$0xff] }
  0x2e   : > { %v1420_v35 = vld [vmem:[#allocation2 + $0x35] sm:$0xff]  ;;  %v1595_v39 = vld [vmem:[%s5567_s1 + $0x100] sm:$0xff] }
  0x2f   : > { %v1424_v41 = vld [vmem:[#allocation2 + $0x55] sm:$0xff]  ;;  %v1586_v45 = vld [vmem:[#allocation2 + $0x1e] sm:$0xff]  ;;  %v1587_v46 = vld [vmem:[#allocation2 + $0x26] sm:$0xff] }
  0x30   : > { %4003 = vmatmul.mubr.msk.f32.vlgmr.msra.gmra.mxu0 %vm225_vm0, %v4556_v24  ;;  %4026 = vmatmul.mubr.msk.f32.vlgmr.msra.gmra.mxu1 %vm225_vm0, %v288_v48  ;;  %v917_v24 = vld [vmem:[#allocation2 + $0x4b] sm:$0xff]  ;;  %v1256_v42 = vld [vmem:[#allocation2 + $0x5c] sm:$0xff] }
  0x31   : > { %4041 = vmatpush3.msra.mxu0 %v922_v43  ;;  %4005 = vmatprep.mubr.msk.f32.mxu0 %vm225_vm0, %v304_v26  ;;  %v1426_v26 = vld [vmem:[%s5567_s1 + $0xe0] sm:$0xff]  ;;  %v1589_v48 = vld [vmem:[#allocation2 + $0x36] sm:$0xff] }
  0x32   : > { %4028 = vmatprep.mubr.msk.f32.mxu1 %vm225_vm0, %v289_v49  ;;  %4042 = vmatprep.subr.mxu0 %v921_v50  ;;  %v1425_v43 = vld [vmem:[#allocation2 + $0x5d] sm:$0xff] }
  0x33   : > { %4043 = vmatpush3.msra.mxu0 %v921_v50  ;;  %4064 = vmatpush3.msra.mxu1 %v1091_v47  ;;  %v1588_v47 = vld [vmem:[#allocation2 + $0x2e] sm:$0xff]  ;;  %v1590_v49 = vld [vmem:[#allocation2 + $0x3e] sm:$0xff]  ;;  %v1591_v50 = vld [vmem:[#allocation2 + $0x46] sm:$0xff] }
  0x34   : > { %4006 = vmatmul.mubr.msk.f32.gmra.mxu0 %vm225_vm0, %v4563_v28  ;;  %4029 = vmatmul.mubr.msk.f32.gmra.mxu1 %vm225_vm0, %v290_v51  ;;  %v918_v28 = vld [vmem:[#allocation2 + $0x53] sm:$0xff] }
  0x35   : > { %4008 = vmatprep.mubr.msk.f32.mxu0 %vm225_vm0, %v306_v32  ;;  %4031 = vmatprep.mubr.msk.f32.mxu1 %vm225_vm0, %v291_v52  ;;  %v1418_v32 = vld [vmem:[#allocation2 + $0x25] sm:$0xff]  ;;  %v1592_v51 = vld [vmem:[#allocation2 + $0x4e] sm:$0xff]  ;;  %v1593_v52 = vld [vmem:[#allocation2 + $0x56] sm:$0xff] }
  0x36   : > { %4044 = vmatprep.subr.mxu0 %v920_v53  ;;  %4065 = vmatprep.subr.mxu1 %v1090_v54 }
  0x37   : > { %4045 = vmatpush3.msra.mxu0 %v920_v53  ;;  %4066 = vmatpush3.msra.mxu1 %v1090_v54  ;;  %v1594_v53 = vld [vmem:[#allocation2 + $0x5e] sm:$0xff] }
  0x38   : > { %4009 = vmatmul.mubr.msk.f32.gmra.mxu0 %vm225_vm0, %v4576_v34  ;;  %4032 = vmatmul.mubr.msk.f32.gmra.mxu1 %vm225_vm0, %v292_v55  ;;  %v1419_v34 = vld [vmem:[#allocation2 + $0x2d] sm:$0xff]  ;;  %v1863_v54 = vld [vmem:[%s5569_s3 + $0xb8] sm:$0xff] }
  0x39   : > { %4011 = vmatprep.mubr.msk.f32.mxu0 %vm225_vm0, %v308_v38  ;;  %4034 = vmatprep.mubr.msk.f32.mxu1 %vm225_vm0, %v293_v56  ;;  %v1422_v38 = vld [vmem:[#allocation2 + $0x45] sm:$0xff]  ;;  %v1827_v55 = vld [vmem:[%s5569_s3 + $0x38] sm:$0xff]  ;;  %v1862_v56 = vld [vmem:[%s5569_s3 + $0xb0] sm:$0xff] }
  0x3a   : > { %4046 = vmatprep.subr.mxu0 %v919_v57  ;;  %4067 = vmatprep.subr.mxu1 %v1089_v58 }
  0x3b   : > { %4047 = vmatpush3.msra.mxu0 %v919_v57  ;;  %4068 = vmatpush3.msra.mxu1 %v1089_v58  ;;  %v1826_v57 = vld [vmem:[%s5569_s3 + $0x30] sm:$0xff]  ;;  %v1861_v58 = vld [vmem:[%s5569_s3 + $0xa8] sm:$0xff] }
  0x3c   : > { %4012 = vmatmul.mubr.msk.f32.gmra.mxu0 %vm225_vm0, %v309_v40  ;;  %4035 = vmatmul.mubr.msk.f32.gmra.mxu1 %vm225_vm0, %v294_v59  ;;  %v1423_v40 = vld [vmem:[#allocation2 + $0x4d] sm:$0xff] }
  0x3d   : > { %4014 = vmatprep.mubr.msk.f32.mxu0 %vm225_vm0, %v310_v44  ;;  %4037 = vmatprep.mubr.msk.f32.mxu1 %vm225_vm0, %v295_v60  ;;  %v1585_v44 = vld [vmem:[#allocation2 + $0x16] sm:$0xff]  ;;  %v1825_v59 = vld [vmem:[%s5569_s3 + $0x28] sm:$0xff]  ;;  %v1860_v60 = vld [vmem:[%s5569_s3 + $0xa0] sm:$0xff] }
  0x3e   : > { %4069 = vmatprep.subr.mxu1 %v1088_v61  ;;  %4086 = vmatprep.subr.mxu0 %v1260_v62 }
  0x3f   : > { %4070 = vmatpush3.msra.mxu1 %v1088_v61  ;;  %v1824_v61 = vld [vmem:[%s5569_s3 + $0x20] sm:$0xff] }
  0x40   : > { %4015 = vmatmul.mubr.msk.f32.gmra.mxu0 %vm225_vm0, %v614_v63  ;;  %4038 = vmatmul.mubr.msk.f32.gmra.mxu1 %vm225_vm0, %v296_v0  ;;  %v1823_v63 = vld [vmem:[%s5569_s3 + $0x18] sm:$0xff]  ;;  %v1858_v0 = vld [vmem:[%s5569_s3 + $0x90] sm:$0xff] }
  0x41   : > { %4048 = vmatprep.mubr.msk.f32.mxu0 %vm225_vm0, %v909_v1  ;;  %4071 = vmatprep.mubr.msk.f32.mxu1 %vm225_vm0, %v1078_v2  ;;  %v1822_v1 = vld [vmem:[%s5569_s3 + $0x10] sm:$0xff]  ;;  %v1857_v2 = vld [vmem:[%s5569_s3 + $0x88] sm:$0xff] }
  0x42   : > { %4109 = vmatprep.subr.mxu1 %v1429_v3 }
  0x44   : > { %4049 = vmatmul.mubr.msk.f32.vlgmr.msra.gmra.mxu0 %vm225_vm0, %v910_v5  ;;  %4072 = vmatmul.mubr.msk.f32.vlgmr.msra.gmra.mxu1 %vm225_vm0, %v1079_v6  ;;  %v1856_v5 = vld [vmem:[%s5569_s3 + $0x80] sm:$0xff] }
  0x45   : > { %4087 = vmatpush3.msra.mxu0 %v1260_v62  ;;  %4051 = vmatprep.mubr.msk.f32.mxu0 %vm225_vm0, %v911_v7  ;;  %v1859_v62 = vld [vmem:[%s5569_s3 + $0x98] sm:$0xff] }
  0x46   : > { %4074 = vmatprep.mubr.msk.f32.mxu1 %vm225_vm0, %v1080_v8  ;;  %4088 = vmatprep.subr.mxu0 %v1259_v9  ;;  %v1846_v7 = vld [vmem:[#allocation3 + $0x2] sm:$0xff] }
  0x47   : > { %4089 = vmatpush3.msra.mxu0 %v1259_v9  ;;  %4110 = vmatpush3.msra.mxu1 %v1429_v3  ;;  %v1821_v3 = vld [vmem:[%s5569_s3 + $0x8] sm:$0xff]  ;;  %v4791_v9 = vld [vmem:[%s5569_s3 + $0xf8] sm:$0xff] }
  0x48   : > { %4052 = vmatmul.mubr.msk.f32.gmra.mxu0 %vm225_vm0, %v912_v10  ;;  %4075 = vmatmul.mubr.msk.f32.gmra.mxu1 %vm225_vm0, %v1081_v11  ;;  %5576 = vst [vmem:[#allocation4_spill] sm:$0xff] %v4791_v9  ;;  %v4797_v10 = vld [vmem:[%s5569_s3 + $0x78] sm:$0xff] }
  0x49   : > { %4054 = vmatprep.mubr.msk.f32.mxu0 %vm225_vm0, %v913_v12  ;;  %4077 = vmatprep.mubr.msk.f32.mxu1 %vm225_vm0, %v1082_v13  ;;  %5577 = vst [vmem:[#allocation5_spill] sm:$0xff] %v4797_v10 }
  0x4a   : > { %4090 = vmatprep.subr.mxu0 %v1258_v14  ;;  %4111 = vmatprep.subr.mxu1 %v1428_v15 }
  0x4b   : > { %4091 = vmatpush3.msra.mxu0 %v1258_v14  ;;  %4112 = vmatpush3.msra.mxu1 %v1428_v15 }
  0x4c   : > { %4055 = vmatmul.mubr.msk.f32.gmra.mxu0 %vm225_vm0, %v914_v16  ;;  %4078 = vmatmul.mubr.msk.f32.gmra.mxu1 %vm225_vm0, %v1083_v17 }
  0x4d   : > { %4057 = vmatprep.mubr.msk.f32.mxu0 %vm225_vm0, %v915_v18  ;;  %4080 = vmatprep.mubr.msk.f32.mxu1 %vm225_vm0, %v1084_v19 }
  0x4e   : > { %4092 = vmatprep.subr.mxu0 %v1257_v20  ;;  %4113 = vmatprep.subr.mxu1 %v1427_v21 }
  0x4f   : > { %4093 = vmatpush3.msra.mxu0 %v1257_v20  ;;  %4114 = vmatpush3.msra.mxu1 %v1427_v21 }
  0x50   : > { %4058 = vmatmul.mubr.msk.f32.gmra.mxu0 %vm225_vm0, %v916_v22  ;;  %4081 = vmatmul.mubr.msk.f32.gmra.mxu1 %vm225_vm0, %v1085_v23 }
  0x51   : > { %4060 = vmatprep.mubr.msk.f32.mxu0 %vm225_vm0, %v917_v24  ;;  %4083 = vmatprep.mubr.msk.f32.mxu1 %vm225_vm0, %v1086_v25 }
  0x52   : > { %4115 = vmatprep.subr.mxu1 %v1426_v26  ;;  %4132 = vmatprep.subr.mxu0 %v1598_v27 }
  0x53   : > { %4116 = vmatpush3.msra.mxu1 %v1426_v26 }
  0x54   : > { %4061 = vmatmul.mubr.msk.f32.gmra.mxu0 %vm225_vm0, %v918_v28  ;;  %4084 = vmatmul.mubr.msk.f32.gmra.mxu1 %vm225_vm0, %v1087_v29 }
  0x55   : > { %4094 = vmatprep.mubr.msk.f32.mxu0 %vm225_vm0, %v1079_v6  ;;  %4117 = vmatprep.mubr.msk.f32.mxu1 %vm225_vm0, %v1416_v30  ;;  %v1820_v6 = vld [vmem:[%s5569_s3] sm:$0xff] }
  0x56   : > { %4155 = vmatprep.subr.mxu1 %v1863_v54 }
  0x58   : > { %4095 = vmatmul.mubr.msk.f32.vlgmr.msra.gmra.mxu0 %vm225_vm0, %v1080_v8  ;;  %4118 = vmatmul.mubr.msk.f32.vlgmr.msra.gmra.mxu1 %vm225_vm0, %v1417_v31  ;;  %v1810_v8 = vld [vmem:[#allocation3] sm:$0xff] }
  0x59   : > { %4133 = vmatpush3.msra.mxu0 %v1598_v27  ;;  %4097 = vmatprep.mubr.msk.f32.mxu0 %vm225_vm0, %v1081_v11 }
  0x5a   : > { %4120 = vmatprep.mubr.msk.f32.mxu1 %vm225_vm0, %v1418_v32  ;;  %4134 = vmatprep.subr.mxu0 %v1597_v33 }
  0x5b   : > { %4135 = vmatpush3.msra.mxu0 %v1597_v33  ;;  %4156 = vmatpush3.msra.mxu1 %v1863_v54 }
  0x5c   : > { %4098 = vmatmul.mubr.msk.f32.gmra.mxu0 %vm225_vm0, %v1082_v13  ;;  %4121 = vmatmul.mubr.msk.f32.gmra.mxu1 %vm225_vm0, %v1419_v34 }
  0x5d   : > { %4100 = vmatprep.mubr.msk.f32.mxu0 %vm225_vm0, %v1083_v17  ;;  %4123 = vmatprep.mubr.msk.f32.mxu1 %vm225_vm0, %v1420_v35 }
  0x5e   : > { %4136 = vmatprep.subr.mxu0 %v1596_v36  ;;  %4157 = vmatprep.subr.mxu1 %v1862_v56 }
  0x5f   : > { %4137 = vmatpush3.msra.mxu0 %v1596_v36  ;;  %4158 = vmatpush3.msra.mxu1 %v1862_v56 }
  0x60   : > { %4101 = vmatmul.mubr.msk.f32.gmra.mxu0 %vm225_vm0, %v1084_v19  ;;  %4124 = vmatmul.mubr.msk.f32.gmra.mxu1 %vm225_vm0, %v1421_v37 }
  0x61   : > { %4103 = vmatprep.mubr.msk.f32.mxu0 %vm225_vm0, %v1085_v23  ;;  %4126 = vmatprep.mubr.msk.f32.mxu1 %vm225_vm0, %v1422_v38 }
  0x62   : > { %4138 = vmatprep.subr.mxu0 %v1595_v39  ;;  %4159 = vmatprep.subr.mxu1 %v1861_v58 }
  0x63   : > { %4139 = vmatpush3.msra.mxu0 %v1595_v39  ;;  %4160 = vmatpush3.msra.mxu1 %v1861_v58 }
  0x64   : > { %4104 = vmatmul.mubr.msk.f32.gmra.mxu0 %vm225_vm0, %v1086_v25  ;;  %4127 = vmatmul.mubr.msk.f32.gmra.mxu1 %vm225_vm0, %v1423_v40 }
  0x65   : > { %4106 = vmatprep.mubr.msk.f32.mxu0 %vm225_vm0, %v1087_v29  ;;  %4129 = vmatprep.mubr.msk.f32.mxu1 %vm225_vm0, %v1424_v41 }
  0x66   : > { %4186 = vmatprep.subr.mxu0 %v1827_v55  ;;  %4161 = vmatprep.subr.mxu1 %v1860_v60 }
  0x67   : > { %4162 = vmatpush3.msra.mxu1 %v1860_v60 }
  0x68   : > { %4107 = vmatmul.mubr.msk.f32.gmra.mxu0 %vm225_vm0, %v1256_v42  ;;  %4130 = vmatmul.mubr.msk.f32.gmra.mxu1 %vm225_vm0, %v1425_v43 }
  0x69   : > { %4140 = vmatprep.mubr.msk.f32.mxu0 %vm225_vm0, %v1585_v44  ;;  %4163 = vmatprep.subr.mxu1 %v1859_v62 }
  0x6a   : > { %4164 = vmatpush3.msra.mxu1 %v1859_v62  ;;  %4171 = vmatprep.mubr.msk.f32.mxu1 %vm233_vm3, %v1846_v7 }
  0x6b   : > { %4165 = vmatprep.subr.mxu1 %v1858_v0 }
  0x6c   : > { %4141 = vmatmul.mubr.msk.f32.vlgmr.msra.gmra.mxu0 %vm225_vm0, %v1586_v45  ;;  %4166 = vmatpush3.msra.mxu1 %v1858_v0 }
  0x6d   : > { %4143 = vmatprep.mubr.msk.f32.mxu0 %vm225_vm0, %v1587_v46  ;;  %4187 = vmatpush3.msra.mxu0 %v1827_v55 }
  0x6e   : > { %4188 = vmatprep.subr.mxu0 %v1826_v57  ;;  %4167 = vmatprep.subr.mxu1 %v1857_v2 }
  0x6f   : > { %4189 = vmatpush3.msra.mxu0 %v1826_v57  ;;  %4168 = vmatpush3.msra.mxu1 %v1857_v2 }
  0x70   : > { %4144 = vmatmul.mubr.msk.f32.gmra.mxu0 %vm225_vm0, %v1588_v47  ;;  %4190 = vmatprep.subr.mxu0 %v1825_v59 }
  0x71   : > { %4146 = vmatprep.mubr.msk.f32.mxu0 %vm225_vm0, %v1589_v48  ;;  %4191 = vmatpush3.msra.mxu0 %v1825_v59 }
  0x72   : > { %4192 = vmatprep.subr.mxu0 %v1824_v61  ;;  %4169 = vmatprep.subr.mxu1 %v1856_v5 }
  0x73   : > { %4193 = vmatpush3.msra.mxu0 %v1824_v61  ;;  %4170 = vmatpush3.msra.mxu1 %v1856_v5 }
  0x74   : > { %4147 = vmatmul.mubr.msk.f32.gmra.mxu0 %vm225_vm0, %v1590_v49  ;;  %4194 = vmatprep.subr.mxu0 %v1823_v63 }
  0x75   : > { %4149 = vmatprep.mubr.msk.f32.mxu0 %vm225_vm0, %v1591_v50  ;;  %4195 = vmatpush3.msra.mxu0 %v1823_v63 }
  0x76   : > { %4196 = vmatprep.subr.mxu0 %v1822_v1  ;;  %4217 = vmatprep.subr.mxu1 %v4791_v9 }
  0x77   : > { %4197 = vmatpush3.msra.mxu0 %v1822_v1 }
  0x78   : > { %4150 = vmatmul.mubr.msk.f32.gmra.mxu0 %vm225_vm0, %v1592_v51  ;;  %4198 = vmatprep.subr.mxu0 %v1821_v3 }
  0x79   : > { %4152 = vmatprep.mubr.msk.f32.mxu0 %vm225_vm0, %v1593_v52  ;;  %4199 = vmatpush3.msra.mxu0 %v1821_v3 }
  0x7a   : > { %4200 = vmatprep.subr.mxu0 %v1820_v6 }
  0x7b   : > { %4201 = vmatpush3.msra.mxu0 %v1820_v6 }
  0x7c   : > { %4153 = vmatmul.mubr.msk.f32.gmra.mxu0 %vm225_vm0, %v1594_v53  ;;  %4248 = vmatprep.subr.mxu0 %v4797_v10 }
  0x7d   : > { %4202 = vmatprep.mubr.msk.f32.mxu0 %vm233_vm3, %v1810_v8 }
  0xdb   : > { %v4800_v11 = vpop.f32.mrf.mxu0 }
  0xdc   : > { %v4802_v12 = vpop.f32.mrf.mxu1 }
  0xdd   : > { %v4804_v13 = vpop.f32.mrf.mxu0 }
  0xde   : > { %v4806_v14 = vpop.f32.mrf.mxu1 }
  0xe0   : > { %v4808_v15 = vpop.f32.mrf.mxu0  ;;  %v4810_v16 = vpop.f32.mrf.mxu1 }
  0xe2   : > { %v4812_v17 = vpop.f32.mrf.mxu0  ;;  %v4814_v18 = vpop.f32.mrf.mxu1 }
  0xe4   : > { %v4816_v19 = vpop.f32.mrf.mxu0  ;;  %v4818_v20 = vpop.f32.mrf.mxu1 }
  0xe6   : > { %v4820_v21 = vpop.f32.mrf.mxu0  ;;  %v4822_v22 = vpop.f32.mrf.mxu1 }
  0xe8   : > { %v4824_v23 = vpop.f32.mrf.mxu0  ;;  %v4826_v24 = vpop.f32.mrf.mxu1 }
  0xea   : > { %v4828_v25 = vpop.f32.mrf.mxu0  ;;  %v4830_v26 = vpop.f32.mrf.mxu1 }
  0xec   : > { %v4832_v27 = vpop.f32.mrf.mxu0  ;;  %v4834_v28 = vpop.f32.mrf.mxu1 }
  0xee   : > { %v4836_v29 = vpop.f32.mrf.mxu0  ;;  %v4838_v30 = vpop.f32.mrf.mxu1 }
  0xf0   : > { %v4004_v31 = vpop.f32.mrf.mxu0  ;;  %v4027_v32 = vpop.f32.mrf.mxu1 }
  0xf2   : > { %v4840_v33 = vpop.f32.mrf.mxu0  ;;  %v4842_v34 = vpop.f32.mrf.mxu1 }
  0xf4   : > { %v4844_v35 = vpop.f32.mrf.mxu0  ;;  %v4030_v36 = vpop.f32.mrf.mxu1 }
  0xf6   : > { %v4846_v37 = vpop.f32.mrf.mxu0  ;;  %v870_v38 = vpop.f32.mrf.mxu1 }
  0xf8   : > { %v4848_v39 = vpop.f32.mrf.mxu0  ;;  %v4850_v40 = vpop.f32.mrf.mxu1 }
  0xfa   : > { %v4852_v41 = vpop.f32.mrf.mxu0  ;;  %v4854_v42 = vpop.f32.mrf.mxu1 }
  0xfc   : > { %v4856_v43 = vpop.f32.mrf.mxu0  ;;  %v4858_v44 = vpop.f32.mrf.mxu1 }
  0xfe   : > { %v4860_v45 = vpop.f32.mrf.mxu0  ;;  %v4862_v46 = vpop.f32.mrf.mxu1 }
 0x100   : > { %v4864_v47 = vpop.f32.mrf.mxu0  ;;  %v4866_v48 = vpop.f32.mrf.mxu1 }
 0x102   : > { %v4868_v49 = vpop.f32.mrf.mxu0  ;;  %v4870_v50 = vpop.f32.mrf.mxu1 }
 0x104   : > { %v4050_v51 = vpop.f32.mrf.mxu0  ;;  %v4073_v52 = vpop.f32.mrf.mxu1 }
 0x106   : > { %v1019_v53 = vpop.f32.mrf.mxu0  ;;  %v1188_v54 = vpop.f32.mrf.mxu1 }
 0x108   : > { %v4053_v55 = vpop.f32.mrf.mxu0  ;;  %v4076_v56 = vpop.f32.mrf.mxu1 }
 0x10a   : > { %v1029_v57 = vpop.f32.mrf.mxu0  ;;  %v4872_v58 = vpop.f32.mrf.mxu1 }
 0x10b   : > { %5578 = vst [vmem:[#allocation6_spill] sm:$0xff] %v4872_v58  ;;  %v567_v58 = vadd.f32 %v4814_v18, %v4812_v17  ;;  %v861_v17 = vadd.f32 %v4842_v34, %v4840_v33  ;;  %v876_v18 = vadd.f32 %v4030_v36, %v4844_v35  ;;  %v891_v34 = vadd.f32 %v4862_v46, %v4860_v45 }
 0x10c   : > { %v4874_v59 = vpop.f32.mrf.mxu0  ;;  %v4876_v60 = vpop.f32.mrf.mxu1  ;;  %v906_v35 = vadd.f32 %v4866_v48, %v4864_v47 }
 0x10d   : > { %5579 = vst [vmem:[#allocation7_spill] sm:$0xff] %v4874_v59  ;;  %5580 = vst [vmem:[#allocation8_spill] sm:$0xff] %v4876_v60  ;;  %v572_v59 = vadd.f32 %v4810_v16, %v4808_v15  ;;  %v4926_v15 = vadd.f32 %v4834_v28, %v4832_v27  ;;  %v4930_v16 = vadd.f32 %v4838_v30, %v4836_v29 }
 0x10e   : > { %v4878_v61 = vpop.f32.mrf.mxu0  ;;  %v4880_v62 = vpop.f32.mrf.mxu1  ;;  %v896_v27 = vadd.f32 %v4858_v44, %v4856_v43  ;;  %v1237_v28 = vadd.f32 %v1188_v54, %v861_v17  ;;  %v1240_v36 = vadd.f32 %v4076_v56, %v876_v18  ;;  %v4955_v43 = vadd.f32 %v4870_v50, %v4868_v49 }
 0x10f   : > { %5581 = vst [vmem:[#allocation9_spill] sm:$0xff] %v4878_v61  ;;  %5582 = vst [vmem:[#allocation10_spill] sm:$0xff] %v4880_v62  ;;  %v1071_v30 = vadd.f32 %v4053_v55, %v572_v59 }
 0x110   : > { %v4882_v63 = vpop.f32.mrf.mxu0  ;;  %v4884_v0 = vpop.f32.mrf.mxu1 }
 0x111   : > { %5583 = vst [vmem:[#allocation11_spill] sm:$0xff] %v4882_v63  ;;  %5584 = vst [vmem:[#allocation12_spill] sm:$0xff] %v4884_v0 }
 0x112   : > { %v4886_v1 = vpop.f32.mrf.mxu0  ;;  %v4888_v2 = vpop.f32.mrf.mxu1  ;;  %v5594_v44 = vld [vmem:[#allocation6_spill] sm:$0xff] }
 0x113   : > { %5585 = vst [vmem:[#allocation13_spill] sm:$0xff] %v4886_v1  ;;  %5586 = vst [vmem:[#allocation14_spill] sm:$0xff] %v4888_v2 }
 0x114   : > { %v4890_v3 = vpop.f32.mrf.mxu0  ;;  %v4892_v5 = vpop.f32.mrf.mxu1  ;;  %v5595_v46 = vld [vmem:[#allocation7_spill] sm:$0xff] }
 0x115   : > { %5587 = vst [vmem:[#allocation15_spill] sm:$0xff] %v4890_v3  ;;  %5588 = vst [vmem:[#allocation16_spill] sm:$0xff] %v4892_v5 }
 0x116   : > { %v4894_v6 = vpop.f32.mrf.mxu0  ;;  %v4896_v7 = vpop.f32.mrf.mxu1 }
 0x117   : > { %5589 = vst [vmem:[#allocation17_spill] sm:$0xff] %v4894_v6  ;;  %5590 = vst [vmem:[#allocation18_spill] sm:$0xff] %v4896_v7  ;;  %v562_v6 = vadd.f32 %v4802_v12, %v4800_v11  ;;  %v557_v7 = vadd.f32 %v4806_v14, %v4804_v13  ;;  %v592_v11 = vadd.f32 %v4826_v24, %v4824_v23 }
 0x118   : > { %v4096_v8 = vpop.f32.mrf.mxu0  ;;  %v4119_v4 = vpop.f32.mrf.mxu1  ;;  %v4922_v12 = vadd.f32 %v4830_v26, %v4828_v25  ;;  %v866_v13 = vadd.f32 %v4027_v32, %v4004_v31  ;;  %v886_v25 = vadd.f32 %v4850_v40, %v4848_v39  ;;  %v881_v26 = vadd.f32 %v4854_v42, %v4852_v41 }
 0x119   : > { %v1069_v14 = vadd.f32 %v4050_v51, %v562_v6 }
 0x11a   : > { %v1357_v10 = vpop.f32.mrf.mxu0  ;;  %v1526_v9 = vpop.f32.mrf.mxu1 }
 0x11b   : > { %v1407_v23 = vadd.f32 %v4096_v8, %v1069_v14  ;;  %v1575_v40 = vadd.f32 %v1526_v9, %v1237_v28  ;;  %v5596_v9 = vld [vmem:[#allocation8_spill] sm:$0xff]  ;;  %v5602_v28 = vld [vmem:[#allocation13_spill] sm:$0xff] }
 0x11c   : > { %v4099_v62 = vpop.f32.mrf.mxu0  ;;  %v4122_v61 = vpop.f32.mrf.mxu1  ;;  %v1242_v56 = vadd.f32 %v5596_v9, %v886_v25 }
 0x11d   : > { %v1409_v41 = vadd.f32 %v4099_v62, %v1071_v30  ;;  %v1578_v48 = vadd.f32 %v4122_v61, %v1240_v36  ;;  %v5598_v61 = vld [vmem:[#allocation10_spill] sm:$0xff] }
 0x11e   : > { %v1367_v63 = vpop.f32.mrf.mxu0  ;;  %v1536_v1 = vpop.f32.mrf.mxu1 }
 0x120   : > { %v4102_v0 = vpop.f32.mrf.mxu0  ;;  %v4125_v5 = vpop.f32.mrf.mxu1 }
 0x121   : > { %v1580_v17 = vadd.f32 %v4125_v5, %v1242_v56  ;;  %v5604_v5 = vmov 0.0  }
 0x122   : > { %v4898_v60 = vpop.f32.mrf.mxu0  ;;  %v1546_v24 = vpop.f32.mrf.mxu1 }
 0x123   : > { %5591 = vst [vmem:[#allocation19_spill] sm:$0xff] %v4898_v60  ;;  %v582_v60 = vadd.f32 %v4818_v20, %v4816_v19  ;;  %v871_v20 = vadd.f32 %v870_v38, %v4846_v37  ;;  %v1070_v37 = vadd.f32 %v1029_v57, %v567_v58  ;;  %v4951_v38 = vld [vmem:[%s5568_s2] ss:$0 sm:$0xff]  ;;  %v5597_v57 = vld [vmem:[#allocation9_spill] sm:$0xff] }
 0x124   : > { %v4900_v2 = vpop.f32.mrf.mxu0  ;;  %v4128_v42 = vpop.f32.mrf.mxu1 }
 0x125   : > { %5592 = vst [vmem:[#allocation20_spill] sm:$0xff] %v4900_v2  ;;  %v577_v2 = vadd.f32 %v4822_v22, %v4820_v21  ;;  %v1238_v21 = vadd.f32 %v4073_v52, %v866_v13  ;;  %v1068_v22 = vadd.f32 %v1019_v53, %v557_v7  ;;  %v1239_v45 = vadd.f32 %v5594_v44, %v871_v20 }
 0x126   : > { %v4902_v3 = vpop.f32.mrf.mxu0  ;;  %v1073_v47 = vadd.f32 %v5595_v46, %v582_v60  ;;  %v1408_v52 = vadd.f32 %v1367_v63, %v1070_v37  ;;  %v1556_v49 = vpop.f32.mrf.mxu1  ;;  %v1241_v13 = vadd.f32 %v5598_v61, %v881_v26  ;;  %v5599_v63 = vld [vmem:[#allocation11_spill] sm:$0xff] }
 0x127   : > { %5593 = vst [vmem:[#allocation21_spill] sm:$0xff] %v4902_v3  ;;  %v1576_v31 = vadd.f32 %v4119_v4, %v1238_v21  ;;  %v1406_v32 = vadd.f32 %v1357_v10, %v1068_v22  ;;  %v1072_v58 = vadd.f32 %v5597_v57, %v577_v2  ;;  %v1577_v59 = vadd.f32 %v1536_v1, %v1239_v45 }
 0x128   : > { %v4916_v3 = vpop.f32.mrf.mxu0  ;;  %v1411_v62 = vadd.f32 %v4102_v0, %v1073_v47  ;;  %v1075_v14 = vadd.f32 %v5599_v63, %v592_v11  ;;  %v1579_v30 = vadd.f32 %v1546_v24, %v1241_v13 }
 0x12a   : > { %v4935_v19 = vpop.f32.mrf.mxu0  ;;  %v5600_v18 = vld [vmem:[#allocation19_spill] sm:$0xff] }
 0x12b   : > { %v1410_v20 = vadd.f32 %v5600_v18, %v1072_v58 }
 0x12c   : > { %v4142_v29 = vpop.f32.mrf.mxu0  ;;  %v5603_v26 = vld [vmem:[#allocation20_spill] sm:$0xff] }
 0x12d   : > { %v1745_v33 = vadd.f32 %v4142_v29, %v1407_v23  ;;  %v5601_v23 = vld [vmem:[#allocation12_spill] sm:$0xff]  ;;  %v1074_v29 = vadd.f32 %v5602_v28, %v4922_v12 }
 0x12e   : > { %v1695_v39 = vpop.f32.mrf.mxu0  ;;  %v1244_v25 = vadd.f32 %v5601_v23, %v896_v27  ;;  %v5612_v23 = vld [vmem:[#allocation5_spill] sm:$0xff] }
 0x12f   : > { %v1755_v4 = vadd.f32 %v1745_v33, %v1576_v31  ;;  %v1744_v10 = vadd.f32 %v1695_v39, %v1406_v32  ;;  %v1413_v31 = vadd.f32 %v5603_v26, %v1075_v14  ;;  %v4131_v32 = vpop.f32.mrf.mxu1 }
 0x130   : > { %v4145_v51 = vpop.f32.mrf.mxu0  ;;  %v1582_v24 = vadd.f32 %v4128_v42, %v1244_v25  ;;  %v2169_v25 = vld [vmem:[%s5569_s3 + $0xe8] sm:$0xff] }
 0x131   : > { %v1772_v53 = vadd.f32 %v4951_v38, %v1755_v4  ;;  %v1754_v54 = vadd.f32 %v1744_v10, %v1575_v40  ;;  %v1747_v55 = vadd.f32 %v4145_v51, %v1409_v41  ;;  %v5605_v40 = vld [vmem:[#allocation14_spill] sm:$0xff]  ;;  %v5606_v41 = vld [vmem:[#allocation15_spill] sm:$0xff]  ;;  %v5607_v4 = vld [vmem:[#allocation21_spill] sm:$0xff]  ;;  %v1566_v42 = vpop.f32.mrf.mxu1 }
 0x132   : > { %v1705_v6 = vpop.f32.mrf.mxu0  ;;  %v1243_v27 = vadd.f32 %v5605_v40, %v891_v34  ;;  %v1077_v12 = vadd.f32 %v5606_v41, %v4926_v15  ;;  %v1412_v10 = vadd.f32 %v5607_v4, %v1074_v29  ;;  %v5608_v51 = vld [vmem:[#allocation16_spill] sm:$0xff]  ;;  %v1841_v4 = vld [vmem:[%s5569_s3 + $0x58] sm:$0xff] }
 0x133   : > { %v1782_v50 = vmax.f32 %v1772_v53, 0.0  ;;  %v1771_v7 = vadd.f32 %v4951_v38, %v1754_v54  ;;  %v1757_v8 = vadd.f32 %v1747_v55, %v1578_v48  ;;  %v1746_v60 = vadd.f32 %v1705_v6, %v1408_v52  ;;  %v5609_v53 = vld [vmem:[#allocation17_spill] sm:$0xff]  ;;  %v1842_v41 = vld [vmem:[%s5569_s3 + $0x60] sm:$0xff] }
 0x134   : > { %v4148_v21 = vpop.f32.mrf.mxu0  ;;  %v1246_v52 = vadd.f32 %v5608_v51, %v906_v35  ;;  %v1076_v54 = vadd.f32 %v5609_v53, %v4930_v16  ;;  %v1581_v34 = vadd.f32 %v1556_v49, %v1243_v27  ;;  %v1415_v55 = vadd.f32 %v4916_v3, %v1077_v12  ;;  %v5610_v35 = vld [vmem:[#allocation18_spill] sm:$0xff]  ;;  %v1839_v51 = vld [vmem:[%s5569_s3 + $0x48] sm:$0xff]  ;;  %v1838_v53 = vld [vmem:[%s5569_s3 + $0x40] sm:$0xff] }
 0x135   : > { %1792 = vst.msk [vmem:[#allocation3 + $0x13] sm:$0xff] %vm233_vm3, %v1782_v50  ;;  %v1781_v2 = vmax.f32 %v1771_v7, 0.0  ;;  %v1774_v0 = vadd.f32 %v4951_v38, %v1757_v8  ;;  %v1756_v1 = vadd.f32 %v1746_v60, %v1577_v59  ;;  %v1749_v22 = vadd.f32 %v4148_v21, %v1411_v62  ;;  %v1844_v21 = vld [vmem:[%s5569_s3 + $0x70] sm:$0xff] }
 0x136   : > { %v1715_v11 = vpop.f32.mrf.mxu0  ;;  %1802 = vst.msk [vmem:[#allocation3 + $0x13] sm:$0x3] %vm1801_vm5, %v5604_v5  ;;  %v1245_v59 = vadd.f32 %v5610_v35, %v4955_v43  ;;  %v1584_v62 = vadd.f32 %v4131_v32, %v1246_v52  ;;  %v1414_v16 = vadd.f32 %v4935_v19, %v1076_v54  ;;  %v2164_v52 = vld [vmem:[%s5569_s3 + $0xc0] sm:$0xff]  ;;  %v1828_v54 = vld [vmem:[#allocation3 + $0x1] sm:$0xff] }
 0x137   : > { %1791 = vst.msk [vmem:[#allocation3 + $0xb] sm:$0xff] %vm233_vm3, %v1781_v2  ;;  %v1784_v33 = vmax.f32 %v1774_v0, 0.0  ;;  %v1773_v36 = vadd.f32 %v4951_v38, %v1756_v1  ;;  %v1759_v37 = vadd.f32 %v1749_v22, %v1580_v17  ;;  %v1748_v39 = vadd.f32 %v1715_v11, %v1410_v20  ;;  %v2170_v20 = vld [vmem:[%s5569_s3 + $0xf0] sm:$0xff]  ;;  %v5611_v22 = vld [vmem:[#allocation4_spill] sm:$0xff] }
 0x138   : > { %v4151_v44 = vpop.f32.mrf.mxu0  ;;  %v1583_v8 = vadd.f32 %v1566_v42, %v1245_v59  ;;  %v2168_v11 = vld [vmem:[%s5569_s3 + $0xe0] sm:$0xff]  ;;  %v2652_v42 = vld [vmem:[%s5569_s3 + $0x178] sm:$0xff] }
 0x139   : > { %1794 = vst.msk [vmem:[#allocation3 + $0x23] sm:$0xff] %vm233_vm3, %v1784_v33  ;;  %v1783_v45 = vmax.f32 %v1773_v36, 0.0  ;;  %v1776_v46 = vadd.f32 %v4951_v38, %v1759_v37  ;;  %v1758_v47 = vadd.f32 %v1748_v39, %v1579_v30  ;;  %v1751_v48 = vadd.f32 %v4151_v44, %v1413_v31  ;;  %v2167_v37 = vld [vmem:[%s5569_s3 + $0xd8] sm:$0xff]  ;;  %v2476_v35 = vld [vmem:[%s5569_s3 + $0x120] sm:$0xff] }
 0x13a   : > { %v1725_v15 = vpop.f32.mrf.mxu0  ;;  %1804 = vst.msk [vmem:[#allocation3 + $0x27] sm:$0x3] %vm1801_vm5, %v5604_v5 }
 0x13b   : > { %1793 = vst.msk [vmem:[#allocation3 + $0x1b] sm:$0xff] %vm233_vm3, %v1783_v45  ;;  %v1786_v9 = vmax.f32 %v1776_v46, 0.0  ;;  %v1775_v56 = vadd.f32 %v4951_v38, %v1758_v47  ;;  %v1761_v57 = vadd.f32 %v1751_v48, %v1582_v24  ;;  %v1750_v58 = vadd.f32 %v1725_v15, %v1412_v10  ;;  %v2165_v10 = vld [vmem:[%s5569_s3 + $0xc8] sm:$0xff]  ;;  %v1840_v46 = vld [vmem:[%s5569_s3 + $0x50] sm:$0xff] }
 0x13c   : > { %v4154_v6 = vpop.f32.mrf.mxu0  ;;  %1803 = vst.msk [vmem:[#allocation3 + $0x1d] sm:$0x3] %vm1801_vm5, %v5604_v5  ;;  %v2478_v15 = vld [vmem:[%s5569_s3 + $0x130] sm:$0xff] }
 0x13d   : > { %1796 = vst.msk [vmem:[#allocation3 + $0x33] sm:$0xff] %vm233_vm3, %v1786_v9  ;;  %v1785_v3 = vmax.f32 %v1775_v56, 0.0  ;;  %v1778_v49 = vadd.f32 %v4951_v38, %v1761_v57  ;;  %v1760_v50 = vadd.f32 %v1750_v58, %v1581_v34  ;;  %v1753_v7 = vadd.f32 %v4154_v6, %v1415_v55  ;;  %v2479_v34 = vld [vmem:[%s5569_s3 + $0x138] sm:$0xff]  ;;  %v2477_v56 = vld [vmem:[%s5569_s3 + $0x128] sm:$0xff]  ;;  %v2651_v58 = vld [vmem:[%s5569_s3 + $0x170] sm:$0xff] }
 0x13e   : > { %v1735_v60 = vpop.f32.mrf.mxu0  ;;  %v4997_v61 = vld [vmem:[#allocation3 + $0xa] sm:$0xff]  ;;  %v4999_v43 = vld [vmem:[#allocation3 + $0x12] sm:$0xff] }
 0x13f   : > { %v1811_v13 = vld [vmem:[#allocation3 + $0x8] sm:$0xff]  ;;  %1795 = vst.msk [vmem:[#allocation3 + $0x2b] sm:$0xff] %vm233_vm3, %v1785_v3  ;;  %v1788_v19 = vmax.f32 %v1778_v49, 0.0  ;;  %v1777_v63 = vadd.f32 %v4951_v38, %v1760_v50  ;;  %v1763_v14 = vadd.f32 %v1753_v7, %v1584_v62  ;;  %v1752_v17 = vadd.f32 %v1735_v60, %v1414_v16  ;;  %4172 = vmatmul.mubr.msk.f32.vlgmr.msra.gmra.mxu1 %vm233_vm3, %v4997_v61  ;;  %v1812_v18 = vld [vmem:[#allocation3 + $0x10] sm:$0xff]  ;;  %v2650_v62 = vld [vmem:[%s5569_s3 + $0x168] sm:$0xff] }
 0x140   : > { %4203 = vmatmul.mubr.msk.f32.vlgmr.msra.gmra.mxu0 %vm233_vm3, %v1811_v13  ;;  %4174 = vmatprep.mubr.msk.f32.mxu1 %vm233_vm3, %v4999_v43  ;;  %1805 = vst.msk [vmem:[#allocation3 + $0x31] sm:$0x3] %vm1801_vm5, %v5604_v5  ;;  %v1829_v55 = vld [vmem:[#allocation3 + $0x9] sm:$0xff]  ;;  %v1830_v9 = vld [vmem:[#allocation3 + $0x11] sm:$0xff]  ;;  %v2474_v50 = vld [vmem:[%s5569_s3 + $0x110] sm:$0xff] }
 0x141   : > { %4205 = vmatprep.mubr.msk.f32.mxu0 %vm233_vm3, %v1812_v18  ;;  %1798 = vst.msk [vmem:[#allocation3 + $0x43] sm:$0xff] %vm233_vm3, %v1788_v19  ;;  %v1787_v2 = vmax.f32 %v1777_v63, 0.0  ;;  %v1780_v0 = vadd.f32 %v4951_v38, %v1763_v14  ;;  %v1762_v1 = vadd.f32 %v1752_v17, %v1583_v8  ;;  %4218 = vmatpush3.msra.mxu1 %v5611_v22  ;;  %v2475_v6 = vld [vmem:[%s5569_s3 + $0x118] sm:$0xff]  ;;  %v2649_v49 = vld [vmem:[%s5569_s3 + $0x160] sm:$0xff]  ;;  %v2647_v13 = vld [vmem:[%s5569_s3 + $0x150] sm:$0xff] }
 0x142   : > { %4249 = vmatpush3.msra.mxu0 %v5612_v23  ;;  %1807 = vst.msk [vmem:[#allocation3 + $0x45] sm:$0x3] %vm1801_vm5, %v5604_v5  ;;  %4219 = vmatprep.subr.mxu1 %v2170_v20  ;;  %v5035_v31 = vld [vmem:[#allocation3 + $0x22] sm:$0xff]  ;;  %v2472_v19 = vld [vmem:[%s5569_s3 + $0x100] sm:$0xff] }
 0x143   : > { %4250 = vmatprep.subr.mxu0 %v1844_v21  ;;  %1797 = vst.msk [vmem:[#allocation3 + $0x3b] sm:$0xff] %vm233_vm3, %v1787_v2  ;;  %v1790_v28 = vmax.f32 %v1780_v0, 0.0  ;;  %v1779_v29 = vadd.f32 %v4951_v38, %v1762_v1  ;;  %4220 = vmatpush3.msra.mxu1 %v2170_v20  ;;  %v5028_v30 = vld [vmem:[#allocation3 + $0x1a] sm:$0xff]  ;;  %v2648_v7 = vld [vmem:[%s5569_s3 + $0x158] sm:$0xff]  ;;  %v2645_v18 = vld [vmem:[%s5569_s3 + $0x140] sm:$0xff] }
 0x144   : > { %v1813_v26 = vld [vmem:[#allocation3 + $0x18] sm:$0xff]  ;;  %4251 = vmatpush3.msra.mxu0 %v1844_v21  ;;  %1806 = vst.msk [vmem:[#allocation3 + $0x3b] sm:$0x3] %vm1801_vm5, %v5604_v5  ;;  %4175 = vmatmul.mubr.msk.f32.gmra.mxu1 %vm233_vm3, %v5028_v30  ;;  %v1814_v33 = vld [vmem:[#allocation3 + $0x20] sm:$0xff]  ;;  %v2462_v17 = vld [vmem:[#allocation3 + $0xb] sm:$0xff] }
 0x145   : > { %4206 = vmatmul.mubr.msk.f32.gmra.mxu0 %vm233_vm3, %v1813_v26  ;;  %v1843_v38 = vld [vmem:[%s5569_s3 + $0x68] sm:$0xff]  ;;  %1800 = vst.msk [vmem:[#allocation3 + $0x53] sm:$0xff] %vm233_vm3, %v1790_v28  ;;  %v1789_v32 = vmax.f32 %v1779_v29, 0.0  ;;  %4221 = vmatprep.subr.mxu1 %v2169_v25  ;;  %v1832_v59 = vld [vmem:[#allocation3 + $0x21] sm:$0xff]  ;;  %v2635_v21 = vld [vmem:[#allocation3 + $0xc] sm:$0xff] }
 0x146   : > { %4177 = vmatprep.mubr.msk.f32.mxu1 %vm233_vm3, %v5035_v31  ;;  %1809 = vst.msk [vmem:[#allocation3 + $0x59] sm:$0x3] %vm1801_vm5, %v5604_v5  ;;  %4208 = vmatprep.mubr.msk.f32.mxu0 %vm233_vm3, %v1814_v33  ;;  %v1815_v36 = vld [vmem:[#allocation3 + $0x28] sm:$0xff]  ;;  %v1831_v57 = vld [vmem:[#allocation3 + $0x19] sm:$0xff] }
 0x147   : > { %4222 = vmatpush3.msra.mxu1 %v2169_v25  ;;  %1799 = vst.msk [vmem:[#allocation3 + $0x4b] sm:$0xff] %vm233_vm3, %v1789_v32  ;;  %v5053_v39 = vld [vmem:[#allocation3 + $0x2a] sm:$0xff]  ;;  %4252 = vmatprep.subr.mxu0 %v1843_v38  ;;  %v5055_v40 = vld [vmem:[#allocation3 + $0x32] sm:$0xff]  ;;  %v2824_v1 = vld [vmem:[%s5569_s3 + $0x1b0] sm:$0xff] }
 0x148   : > { %4223 = vmatprep.subr.mxu1 %v2168_v11  ;;  %v1816_v27 = vld [vmem:[#allocation3 + $0x30] sm:$0xff]  ;;  %1808 = vst.msk [vmem:[#allocation3 + $0x4f] sm:$0x3] %vm1801_vm5, %v5604_v5  ;;  %4178 = vmatmul.mubr.msk.f32.gmra.mxu1 %vm233_vm3, %v5053_v39  ;;  %v2166_v5 = vld [vmem:[%s5569_s3 + $0xd0] sm:$0xff]  ;;  %v2825_v20 = vld [vmem:[%s5569_s3 + $0x1b8] sm:$0xff] }
 0x149   : > { %4209 = vmatmul.mubr.msk.f32.gmra.mxu0 %vm233_vm3, %v1815_v36  ;;  %4224 = vmatpush3.msra.mxu1 %v2168_v11  ;;  %v1833_v16 = vld [vmem:[#allocation3 + $0x29] sm:$0xff]  ;;  %v1834_v3 = vld [vmem:[#allocation3 + $0x31] sm:$0xff]  ;;  %v2464_v23 = vld [vmem:[#allocation3 + $0x1b] sm:$0xff] }
 0x14a   : > { %4180 = vmatprep.mubr.msk.f32.mxu1 %vm233_vm3, %v5055_v40  ;;  %4211 = vmatprep.mubr.msk.f32.mxu0 %vm233_vm3, %v1816_v27  ;;  %v5082_v44 = vld [vmem:[#allocation3 + $0x42] sm:$0xff]  ;;  %v2463_v2 = vld [vmem:[#allocation3 + $0x13] sm:$0xff]  ;;  %v2466_v26 = vld [vmem:[#allocation3 + $0x2b] sm:$0xff] }
 0x14b   : > { %4225 = vmatprep.subr.mxu1 %v2167_v37  ;;  %4253 = vmatpush3.msra.mxu0 %v1843_v38  ;;  %v5071_v12 = vld [vmem:[#allocation3 + $0x3a] sm:$0xff]  ;;  %v2998_v22 = vld [vmem:[%s5569_s3 + $0x1f8] sm:$0xff]  ;;  %v2822_v11 = vld [vmem:[%s5569_s3 + $0x1a0] sm:$0xff] }
 0x14c   : > { %4226 = vmatpush3.msra.mxu1 %v2167_v37  ;;  %v1817_v24 = vld [vmem:[#allocation3 + $0x38] sm:$0xff]  ;;  %4254 = vmatprep.subr.mxu0 %v1842_v41  ;;  %v1818_v45 = vld [vmem:[#allocation3 + $0x40] sm:$0xff]  ;;  %v5217_v38 = vld [vmem:[#allocation3 + $0x2c] sm:$0xff] }
 0x14d   : > { %4181 = vmatmul.mubr.msk.f32.gmra.mxu1 %vm233_vm3, %v5071_v12  ;;  %4255 = vmatpush3.msra.mxu0 %v1842_v41  ;;  %v1835_v8 = vld [vmem:[#allocation3 + $0x39] sm:$0xff]  ;;  %v1836_v60 = vld [vmem:[#allocation3 + $0x41] sm:$0xff]  ;;  %v2995_v27 = vld [vmem:[%s5569_s3 + $0x1e0] sm:$0xff] }
 0x14e   : > { %4227 = vmatprep.subr.mxu1 %v2166_v5  ;;  %4212 = vmatmul.mubr.msk.f32.gmra.mxu0 %vm233_vm3, %v1817_v24  ;;  %v2163_v63 = vld [vmem:[#allocation3 + $0x52] sm:$0xff]  ;;  %v5197_v25 = vld [vmem:[#allocation3 + $0x1c] sm:$0xff]  ;;  %v2821_v37 = vld [vmem:[%s5569_s3 + $0x198] sm:$0xff] }
 0x14f   : > { %4256 = vmatprep.subr.mxu0 %v1841_v4  ;;  %4183 = vmatprep.mubr.msk.f32.mxu1 %vm233_vm3, %v5082_v44  ;;  %v5090_v47 = vld [vmem:[#allocation3 + $0x4a] sm:$0xff]  ;;  %v5187_v0 = vld [vmem:[#allocation3 + $0x14] sm:$0xff]  ;;  %v2820_v41 = vld [vmem:[%s5569_s3 + $0x190] sm:$0xff] }
 0x150   : > { %4214 = vmatprep.mubr.msk.f32.mxu0 %vm233_vm3, %v1818_v45  ;;  %4228 = vmatpush3.msra.mxu1 %v2166_v5  ;;  %v1819_v48 = vld [vmem:[#allocation3 + $0x48] sm:$0xff]  ;;  %v2823_v28 = vld [vmem:[%s5569_s3 + $0x1a8] sm:$0xff]  ;;  %v2993_v45 = vld [vmem:[%s5569_s3 + $0x1d0] sm:$0xff] }
 0x151   : > { %4257 = vmatpush3.msra.mxu0 %v1841_v4  ;;  %4229 = vmatprep.subr.mxu1 %v2165_v10  ;;  %v1837_v14 = vld [vmem:[#allocation3 + $0x49] sm:$0xff]  ;;  %v2467_v32 = vld [vmem:[#allocation3 + $0x33] sm:$0xff] }
 0x152   : > { %4258 = vmatprep.subr.mxu0 %v1840_v46  ;;  %4230 = vmatpush3.msra.mxu1 %v2165_v10  ;;  %v2465_v29 = vld [vmem:[#allocation3 + $0x23] sm:$0xff]  ;;  %v2996_v33 = vld [vmem:[%s5569_s3 + $0x1e8] sm:$0xff]  ;;  %v2470_v10 = vld [vmem:[#allocation3 + $0x4b] sm:$0xff] }
 0x153   : > { %4259 = vmatpush3.msra.mxu0 %v1840_v46  ;;  %4184 = vmatmul.mubr.msk.f32.gmra.mxu1 %vm233_vm3, %v5090_v47  ;;  %v5225_v36 = vld [vmem:[#allocation3 + $0x34] sm:$0xff]  ;;  %v2469_v5 = vld [vmem:[#allocation3 + $0x43] sm:$0xff] }
 0x154   : > { %4215 = vmatmul.mubr.msk.f32.gmra.mxu0 %vm233_vm3, %v1819_v48  ;;  %4260 = vmatprep.subr.mxu0 %v1839_v51  ;;  %v2642_v24 = vld [vmem:[#allocation3 + $0x44] sm:$0xff]  ;;  %v2819_v4 = vld [vmem:[%s5569_s3 + $0x188] sm:$0xff] }
 0x155   : > { %4231 = vmatprep.subr.mxu1 %v2164_v52  ;;  %4233 = vmatprep.mubr.msk.f32.mxu1 %vm233_vm3, %v4997_v61  ;;  %v2473_v61 = vld [vmem:[%s5569_s3 + $0x108] sm:$0xff] }
 0x156   : > { %4261 = vmatpush3.msra.mxu0 %v1839_v51  ;;  %4232 = vmatpush3.msra.mxu1 %v2164_v52  ;;  %v2992_v46 = vld [vmem:[%s5569_s3 + $0x1c8] sm:$0xff]  ;;  %v2991_v52 = vld [vmem:[%s5569_s3 + $0x1c0] sm:$0xff] }
 0x157   : > { %4262 = vmatprep.subr.mxu0 %v1838_v53  ;;  %4264 = vmatprep.mubr.msk.f32.mxu0 %vm233_vm3, %v1828_v54  ;;  %v2471_v48 = vld [vmem:[#allocation3 + $0x53] sm:$0xff] }
 0x158   : > { %4263 = vmatpush3.msra.mxu0 %v1838_v53  ;;  %4279 = vmatprep.subr.mxu1 %v2479_v34  ;;  %v2644_v51 = vld [vmem:[#allocation3 + $0x54] sm:$0xff]  ;;  %v3171_v53 = vld [vmem:[%s5569_s3 + $0x238] sm:$0xff] }
 0x159   : > { %4234 = vmatmul.mubr.msk.f32.vlgmr.msra.gmra.mxu1 %vm233_vm3, %v4999_v43  ;;  %4265 = vmatmul.mubr.msk.f32.vlgmr.msra.gmra.mxu0 %vm233_vm3, %v1829_v55  ;;  %v2646_v43 = vld [vmem:[%s5569_s3 + $0x148] sm:$0xff]  ;;  %v3170_v55 = vld [vmem:[%s5569_s3 + $0x230] sm:$0xff] }
 0x15a   : > { %4280 = vmatpush3.msra.mxu1 %v2479_v34  ;;  %4236 = vmatprep.mubr.msk.f32.mxu1 %vm233_vm3, %v5028_v30  ;;  %v5205_v30 = vld [vmem:[#allocation3 + $0x24] sm:$0xff]  ;;  %v2981_v54 = vld [vmem:[#allocation3 + $0x15] sm:$0xff] }
 0x15b   : > { %4267 = vmatprep.mubr.msk.f32.mxu0 %vm233_vm3, %v1830_v9  ;;  %4281 = vmatprep.subr.mxu1 %v2478_v15  ;;  %v2982_v34 = vld [vmem:[#allocation3 + $0x1d] sm:$0xff]  ;;  %v2984_v9 = vld [vmem:[#allocation3 + $0x2d] sm:$0xff] }
 0x15c   : > { %4310 = vmatprep.subr.mxu0 %v2652_v42  ;;  %4282 = vmatpush3.msra.mxu1 %v2478_v15  ;;  %v2983_v15 = vld [vmem:[#allocation3 + $0x25] sm:$0xff] }
 0x15d   : > { %4311 = vmatpush3.msra.mxu0 %v2652_v42  ;;  %4237 = vmatmul.mubr.msk.f32.gmra.mxu1 %vm233_vm3, %v5035_v31  ;;  %v2997_v31 = vld [vmem:[%s5569_s3 + $0x1f0] sm:$0xff]  ;;  %v3169_v42 = vld [vmem:[%s5569_s3 + $0x228] sm:$0xff] }
 0x15e   : > { %4268 = vmatmul.mubr.msk.f32.gmra.mxu0 %vm233_vm3, %v1831_v57  ;;  %4283 = vmatprep.subr.mxu1 %v2477_v56  ;;  %v2985_v57 = vld [vmem:[#allocation3 + $0x35] sm:$0xff] }
 0x15f   : > { %4239 = vmatprep.mubr.msk.f32.mxu1 %vm233_vm3, %v5053_v39  ;;  %4270 = vmatprep.mubr.msk.f32.mxu0 %vm233_vm3, %v1832_v59  ;;  %v2468_v39 = vld [vmem:[#allocation3 + $0x3b] sm:$0xff]  ;;  %v2987_v59 = vld [vmem:[#allocation3 + $0x45] sm:$0xff] }
 0x160   : > { %4284 = vmatpush3.msra.mxu1 %v2477_v56  ;;  %4312 = vmatprep.subr.mxu0 %v2651_v58  ;;  %v3168_v56 = vld [vmem:[%s5569_s3 + $0x220] sm:$0xff] }
 0x161   : > { %4285 = vmatprep.subr.mxu1 %v2476_v35  ;;  %4313 = vmatpush3.msra.mxu0 %v2651_v58  ;;  %v2986_v58 = vld [vmem:[#allocation3 + $0x3d] sm:$0xff] }
 0x162   : > { %4240 = vmatmul.mubr.msk.f32.gmra.mxu1 %vm233_vm3, %v5055_v40  ;;  %4271 = vmatmul.mubr.msk.f32.gmra.mxu0 %vm233_vm3, %v1833_v16  ;;  %v5233_v40 = vld [vmem:[#allocation3 + $0x3c] sm:$0xff]  ;;  %v2988_v16 = vld [vmem:[#allocation3 + $0x4d] sm:$0xff] }
 0x163   : > { %4286 = vmatpush3.msra.mxu1 %v2476_v35  ;;  %4314 = vmatprep.subr.mxu0 %v2650_v62  ;;  %v3167_v35 = vld [vmem:[%s5569_s3 + $0x218] sm:$0xff] }
 0x164   : > { %4242 = vmatprep.mubr.msk.f32.mxu1 %vm233_vm3, %v5071_v12  ;;  %4273 = vmatprep.mubr.msk.f32.mxu0 %vm233_vm3, %v1834_v3  ;;  %v2994_v12 = vld [vmem:[%s5569_s3 + $0x1d8] sm:$0xff]  ;;  %v2989_v3 = vld [vmem:[#allocation3 + $0x55] sm:$0xff] }
 0x165   : > { %4287 = vmatprep.subr.mxu1 %v2475_v6  ;;  %4315 = vmatpush3.msra.mxu0 %v2650_v62  ;;  %v3166_v62 = vld [vmem:[%s5569_s3 + $0x210] sm:$0xff] }
 0x166   : > { %4288 = vmatpush3.msra.mxu1 %v2475_v6  ;;  %4316 = vmatprep.subr.mxu0 %v2649_v49  ;;  %v3165_v6 = vld [vmem:[%s5569_s3 + $0x208] sm:$0xff] }
 0x167   : > { %4243 = vmatmul.mubr.msk.f32.gmra.mxu1 %vm233_vm3, %v5082_v44  ;;  %4317 = vmatpush3.msra.mxu0 %v2649_v49  ;;  %v2643_v44 = vld [vmem:[#allocation3 + $0x4c] sm:$0xff]  ;;  %v2990_v49 = vld [vmem:[#allocation3 + $0x5d] sm:$0xff] }
 0x168   : > { %4289 = vmatprep.subr.mxu1 %v2474_v50  ;;  %4274 = vmatmul.mubr.msk.f32.gmra.mxu0 %vm233_vm3, %v1835_v8  ;;  %v3154_v8 = vld [vmem:[#allocation3 + $0x16] sm:$0xff] }
 0x169   : > { %4318 = vmatprep.subr.mxu0 %v2648_v7  ;;  %4245 = vmatprep.mubr.msk.f32.mxu1 %vm233_vm3, %v5090_v47  ;;  %v2818_v47 = vld [vmem:[%s5569_s3 + $0x180] sm:$0xff] }
 0x16a   : > { %4276 = vmatprep.mubr.msk.f32.mxu0 %vm233_vm3, %v1836_v60  ;;  %4290 = vmatpush3.msra.mxu1 %v2474_v50  ;;  %v2817_v50 = vld [vmem:[#allocation3 + $0x5c] sm:$0xff] }
 0x16b   : > { %4319 = vmatpush3.msra.mxu0 %v2648_v7  ;;  %4291 = vmatprep.subr.mxu1 %v2473_v61  ;;  %v3164_v7 = vld [vmem:[%s5569_s3 + $0x200] sm:$0xff]  ;;  %v3155_v60 = vld [vmem:[#allocation3 + $0x1e] sm:$0xff] }
 0x16c   : > { %4320 = vmatprep.subr.mxu0 %v2647_v13  ;;  %4292 = vmatpush3.msra.mxu1 %v2473_v61  ;;  %v3156_v61 = vld [vmem:[#allocation3 + $0x26] sm:$0xff] }
 0x16d   : > { %4321 = vmatpush3.msra.mxu0 %v2647_v13  ;;  %4246 = vmatmul.mubr.msk.f32.gmra.mxu1 %vm233_vm3, %v2163_v63  ;;  %v3157_v13 = vld [vmem:[#allocation3 + $0x2e] sm:$0xff]  ;;  %v3160_v63 = vld [vmem:[#allocation3 + $0x46] sm:$0xff] }
 0x16e   : > { %4277 = vmatmul.mubr.msk.f32.gmra.mxu0 %vm233_vm3, %v1837_v14  ;;  %4322 = vmatprep.subr.mxu0 %v2646_v43  ;;  %v3161_v14 = vld [vmem:[#allocation3 + $0x4e] sm:$0xff] }
 0x16f   : > { %4293 = vmatprep.subr.mxu1 %v2472_v19  ;;  %4295 = vmatprep.mubr.msk.f32.mxu1 %vm233_vm3, %v2462_v17  ;;  %v3162_v17 = vld [vmem:[#allocation3 + $0x56] sm:$0xff] }
 0x170   : > { %4323 = vmatpush3.msra.mxu0 %v2646_v43  ;;  %4326 = vmatprep.mubr.msk.f32.mxu0 %vm233_vm3, %v2635_v21  ;;  %v3158_v43 = vld [vmem:[#allocation3 + $0x36] sm:$0xff] }
 0x171   : > { %4294 = vmatpush3.msra.mxu1 %v2472_v19  ;;  %4324 = vmatprep.subr.mxu0 %v2645_v18  ;;  %v3159_v19 = vld [vmem:[#allocation3 + $0x3e] sm:$0xff] }
 0x172   : > { %4341 = vmatprep.subr.mxu1 %v2825_v20  ;;  %4325 = vmatpush3.msra.mxu0 %v2645_v18  ;;  %v3163_v18 = vld [vmem:[#allocation3 + $0x5e] sm:$0xff] }
 0x173   : > { %4296 = vmatmul.mubr.msk.f32.vlgmr.msra.gmra.mxu1 %vm233_vm3, %v2463_v2  ;;  %4327 = vmatmul.mubr.msk.f32.vlgmr.msra.gmra.mxu0 %vm233_vm3, %v5187_v0 }
 0x174   : > { %4342 = vmatpush3.msra.mxu1 %v2825_v20  ;;  %4298 = vmatprep.mubr.msk.f32.mxu1 %vm233_vm3, %v2464_v23 }
 0x175   : > { %4329 = vmatprep.mubr.msk.f32.mxu0 %vm233_vm3, %v5197_v25  ;;  %4343 = vmatprep.subr.mxu1 %v2824_v1 }
 0x176   : > { %4372 = vmatprep.subr.mxu0 %v2998_v22  ;;  %4344 = vmatpush3.msra.mxu1 %v2824_v1 }
 0x177   : > { %4373 = vmatpush3.msra.mxu0 %v2998_v22  ;;  %4299 = vmatmul.mubr.msk.f32.gmra.mxu1 %vm233_vm3, %v2465_v29 }
 0x178   : > { %4330 = vmatmul.mubr.msk.f32.gmra.mxu0 %vm233_vm3, %v5205_v30  ;;  %4345 = vmatprep.subr.mxu1 %v2823_v28 }
 0x179   : > { %4301 = vmatprep.mubr.msk.f32.mxu1 %vm233_vm3, %v2466_v26  ;;  %4332 = vmatprep.mubr.msk.f32.mxu0 %vm233_vm3, %v5217_v38 }
 0x17a   : > { %4346 = vmatpush3.msra.mxu1 %v2823_v28  ;;  %4374 = vmatprep.subr.mxu0 %v2997_v31 }
 0x17b   : > { %4347 = vmatprep.subr.mxu1 %v2822_v11  ;;  %4375 = vmatpush3.msra.mxu0 %v2997_v31 }
 0x17c   : > { %4302 = vmatmul.mubr.msk.f32.gmra.mxu1 %vm233_vm3, %v2467_v32  ;;  %4333 = vmatmul.mubr.msk.f32.gmra.mxu0 %vm233_vm3, %v5225_v36 }
 0x17d   : > { %4348 = vmatpush3.msra.mxu1 %v2822_v11  ;;  %4376 = vmatprep.subr.mxu0 %v2996_v33 }
 0x17e   : > { %4304 = vmatprep.mubr.msk.f32.mxu1 %vm233_vm3, %v2468_v39  ;;  %4335 = vmatprep.mubr.msk.f32.mxu0 %vm233_vm3, %v5233_v40 }
 0x17f   : > { %4349 = vmatprep.subr.mxu1 %v2821_v37  ;;  %4377 = vmatpush3.msra.mxu0 %v2996_v33 }
 0x180   : > { %4350 = vmatpush3.msra.mxu1 %v2821_v37  ;;  %4378 = vmatprep.subr.mxu0 %v2995_v27 }
 0x181   : > { %4305 = vmatmul.mubr.msk.f32.gmra.mxu1 %vm233_vm3, %v2469_v5  ;;  %4379 = vmatpush3.msra.mxu0 %v2995_v27 }
 0x182   : > { %4351 = vmatprep.subr.mxu1 %v2820_v41  ;;  %4336 = vmatmul.mubr.msk.f32.gmra.mxu0 %vm233_vm3, %v2642_v24 }
 0x183   : > { %4380 = vmatprep.subr.mxu0 %v2994_v12  ;;  %4307 = vmatprep.mubr.msk.f32.mxu1 %vm233_vm3, %v2470_v10 }
 0x184   : > { %4338 = vmatprep.mubr.msk.f32.mxu0 %vm233_vm3, %v2643_v44  ;;  %4352 = vmatpush3.msra.mxu1 %v2820_v41 }
 0x185   : > { %4381 = vmatpush3.msra.mxu0 %v2994_v12  ;;  %4353 = vmatprep.subr.mxu1 %v2819_v4 }
 0x186   : > { %4382 = vmatprep.subr.mxu0 %v2993_v45  ;;  %4354 = vmatpush3.msra.mxu1 %v2819_v4 }
 0x187   : > { %4383 = vmatpush3.msra.mxu0 %v2993_v45  ;;  %4308 = vmatmul.mubr.msk.f32.gmra.mxu1 %vm233_vm3, %v2471_v48 }
 0x188   : > { %4339 = vmatmul.mubr.msk.f32.gmra.mxu0 %vm233_vm3, %v2644_v51  ;;  %4384 = vmatprep.subr.mxu0 %v2992_v46 }
 0x189   : > { %4355 = vmatprep.subr.mxu1 %v2818_v47  ;;  %4357 = vmatprep.mubr.msk.f32.mxu1 %vm233_vm3, %v5187_v0 }
 0x18a   : > { %4385 = vmatpush3.msra.mxu0 %v2992_v46  ;;  %4388 = vmatprep.mubr.msk.f32.mxu0 %vm233_vm3, %v2981_v54 }
 0x18b   : > { %4356 = vmatpush3.msra.mxu1 %v2818_v47  ;;  %4386 = vmatprep.subr.mxu0 %v2991_v52 }
 0x18c   : > { %4403 = vmatprep.subr.mxu1 %v3171_v53  ;;  %4387 = vmatpush3.msra.mxu0 %v2991_v52 }
 0x18d   : > { %4358 = vmatmul.mubr.msk.f32.vlgmr.msra.gmra.mxu1 %vm233_vm3, %v5197_v25  ;;  %4389 = vmatmul.mubr.msk.f32.vlgmr.msra.gmra.mxu0 %vm233_vm3, %v2982_v34 }
 0x18e   : > { %4404 = vmatpush3.msra.mxu1 %v3171_v53  ;;  %4360 = vmatprep.mubr.msk.f32.mxu1 %vm233_vm3, %v5205_v30 }
 0x18f   : > { %4391 = vmatprep.mubr.msk.f32.mxu0 %vm233_vm3, %v2983_v15  ;;  %4405 = vmatprep.subr.mxu1 %v3170_v55 }
 0x190   : > { %4406 = vmatpush3.msra.mxu1 %v3170_v55 }
 0x191   : > { %4361 = vmatmul.mubr.msk.f32.gmra.mxu1 %vm233_vm3, %v5217_v38  ;;  %4392 = vmatmul.mubr.msk.f32.gmra.mxu0 %vm233_vm3, %v2984_v9 }
 0x192   : > { %4407 = vmatprep.subr.mxu1 %v3169_v42  ;;  %4363 = vmatprep.mubr.msk.f32.mxu1 %vm233_vm3, %v5225_v36 }
 0x193   : > { %4394 = vmatprep.mubr.msk.f32.mxu0 %vm233_vm3, %v2985_v57  ;;  %4408 = vmatpush3.msra.mxu1 %v3169_v42 }
 0x194   : > { %4409 = vmatprep.subr.mxu1 %v3168_v56 }
 0x195   : > { %4364 = vmatmul.mubr.msk.f32.gmra.mxu1 %vm233_vm3, %v5233_v40  ;;  %4395 = vmatmul.mubr.msk.f32.gmra.mxu0 %vm233_vm3, %v2986_v58 }
 0x196   : > { %4410 = vmatpush3.msra.mxu1 %v3168_v56  ;;  %4366 = vmatprep.mubr.msk.f32.mxu1 %vm233_vm3, %v2642_v24 }
 0x197   : > { %4397 = vmatprep.mubr.msk.f32.mxu0 %vm233_vm3, %v2987_v59  ;;  %4411 = vmatprep.subr.mxu1 %v3167_v35 }
 0x198   : > { %4412 = vmatpush3.msra.mxu1 %v3167_v35 }
 0x199   : > { %4367 = vmatmul.mubr.msk.f32.gmra.mxu1 %vm233_vm3, %v2643_v44  ;;  %4398 = vmatmul.mubr.msk.f32.gmra.mxu0 %vm233_vm3, %v2988_v16 }
 0x19a   : > { %4413 = vmatprep.subr.mxu1 %v3166_v62  ;;  %4369 = vmatprep.mubr.msk.f32.mxu1 %vm233_vm3, %v2644_v51 }
 0x19b   : > { %4400 = vmatprep.mubr.msk.f32.mxu0 %vm233_vm3, %v2989_v3  ;;  %4414 = vmatpush3.msra.mxu1 %v3166_v62 }
 0x19c   : > { %4415 = vmatprep.subr.mxu1 %v3165_v6 }
 0x19d   : > { %4416 = vmatpush3.msra.mxu1 %v3165_v6  ;;  %4401 = vmatmul.mubr.msk.f32.gmra.mxu0 %vm233_vm3, %v2990_v49 }
 0x19e   : > { %4370 = vmatmul.mubr.msk.f32.gmra.mxu1 %vm233_vm3, %v2817_v50  ;;  %4417 = vmatprep.subr.mxu1 %v3164_v7 }
 0x19f   : > { %4419 = vmatprep.mubr.msk.f32.mxu1 %vm233_vm3, %v3154_v8  ;;  %4418 = vmatpush3.msra.mxu1 %v3164_v7 }
 0x1a2   : > { %4420 = vmatmul.mubr.msk.f32.vlgmr.msra.gmra.mxu1 %vm233_vm3, %v3155_v60 }
 0x1a3   : > { %4422 = vmatprep.mubr.msk.f32.mxu1 %vm233_vm3, %v3156_v61 }
 0x1a6   : > { %4423 = vmatmul.mubr.msk.f32.gmra.mxu1 %vm233_vm3, %v3157_v13 }
 0x1a7   : > { %4425 = vmatprep.mubr.msk.f32.mxu1 %vm233_vm3, %v3158_v43 }
 0x1aa   : > { %4426 = vmatmul.mubr.msk.f32.gmra.mxu1 %vm233_vm3, %v3159_v19 }
 0x1ab   : > { %4428 = vmatprep.mubr.msk.f32.mxu1 %vm233_vm3, %v3160_v63 }
 0x1ae   : > { %4429 = vmatmul.mubr.msk.f32.gmra.mxu1 %vm233_vm3, %v3161_v14 }
 0x1af   : > { %4431 = vmatprep.mubr.msk.f32.mxu1 %vm233_vm3, %v3162_v17 }
 0x1b2   : > { %4432 = vmatmul.mubr.msk.f32.gmra.mxu1 %vm233_vm3, %v3163_v18 }
 0x1ff   : > { %v5327_v20 = vpop.f32.mrf.mxu1 }
 0x200   : > { %v5329_v21 = vpop.f32.mrf.mxu0 }
 0x201   : > { %v5331_v2 = vpop.f32.mrf.mxu1 }
 0x202   : > { %v5333_v0 = vpop.f32.mrf.mxu0 }
 0x204   : > { %v5335_v1 = vpop.f32.mrf.mxu1 }
 0x205   : > { %v5337_v22 = vpop.f32.mrf.mxu0 }
 0x206   : > { %v5339_v23 = vpop.f32.mrf.mxu1 }
 0x207   : > { %v5341_v25 = vpop.f32.mrf.mxu0 }
 0x208   : > { %v5343_v28 = vpop.f32.mrf.mxu1 }
 0x209   : > { %v5345_v29 = vpop.f32.mrf.mxu0 }
 0x20a   : > { %v5347_v30 = vpop.f32.mrf.mxu1 }
 0x20b   : > { %v5349_v26 = vpop.f32.mrf.mxu0 }
 0x20d   : > { %v5351_v31 = vpop.f32.mrf.mxu1 }
 0x20e   : > { %v5353_v11 = vpop.f32.mrf.mxu0 }
 0x20f   : > { %v5355_v38 = vpop.f32.mrf.mxu1 }
 0x210   : > { %v5357_v32 = vpop.f32.mrf.mxu0 }
 0x213   : > { %v5359_v33 = vpop.f32.mrf.mxu1 }
 0x214   : > { %v5361_v36 = vpop.f32.mrf.mxu0 }
 0x215   : > { %v5363_v37 = vpop.f32.mrf.mxu1 }
 0x216   : > { %v5365_v39 = vpop.f32.mrf.mxu0 }
 0x219   : > { %v4235_v40 = vpop.f32.mrf.mxu1  ;;  %v4266_v27 = vpop.f32.mrf.mxu0 }
 0x21b   : > { %v5367_v41 = vpop.f32.mrf.mxu1  ;;  %v5369_v5 = vpop.f32.mrf.mxu0 }
 0x21d   : > { %v5371_v12 = vpop.f32.mrf.mxu1 }
 0x21e   : > { %v4269_v24 = vpop.f32.mrf.mxu0 }
 0x21f   : > { %v5373_v4 = vpop.f32.mrf.mxu1 }
 0x220   : > { %v5375_v10 = vpop.f32.mrf.mxu0 }
 0x222   : > { %v5377_v44 = vpop.f32.mrf.mxu1  ;;  %v5379_v45 = vpop.f32.mrf.mxu0 }
 0x224   : > { %v5381_v46 = vpop.f32.mrf.mxu1  ;;  %v5383_v47 = vpop.f32.mrf.mxu0 }
 0x227   : > { %v5385_v48 = vpop.f32.mrf.mxu1 }
 0x228   : > { %v5387_v51 = vpop.f32.mrf.mxu0 }
 0x229   : > { %v5389_v52 = vpop.f32.mrf.mxu1 }
 0x22a   : > { %v5391_v53 = vpop.f32.mrf.mxu0 }
 0x22d   : > { %v5393_v54 = vpop.f32.mrf.mxu1 }
 0x22e   : > { %v5395_v34 = vpop.f32.mrf.mxu0 }
 0x22f   : > { %v5397_v55 = vpop.f32.mrf.mxu1 }
 0x230   : > { %v5399_v15 = vpop.f32.mrf.mxu0 }
 0x233   : > { %v4297_v42 = vpop.f32.mrf.mxu1  ;;  %v4328_v9 = vpop.f32.mrf.mxu0 }
 0x235   : > { %v2576_v56 = vpop.f32.mrf.mxu1  ;;  %v2749_v57 = vpop.f32.mrf.mxu0 }
 0x237   : > { %v4300_v58 = vpop.f32.mrf.mxu1 }
 0x238   : > { %v4331_v35 = vpop.f32.mrf.mxu0 }
 0x239   : > { %v2586_v59 = vpop.f32.mrf.mxu1 }
 0x23a   : > { %v5401_v62 = vpop.f32.mrf.mxu0 }
 0x23c   : > { %v5403_v16 = vpop.f32.mrf.mxu1  ;;  %v5405_v6 = vpop.f32.mrf.mxu0 }
 0x23d   : > { %5613 = vst [vmem:[#allocation6_spill] sm:$0xff] %v5403_v16  ;;  %5614 = vst [vmem:[#allocation7_spill] sm:$0xff] %v5405_v6  ;;  %v2121_v16 = vadd.f32 %v5337_v22, %v5335_v1  ;;  %v5459_v1 = vadd.f32 %v5361_v36, %v5359_v33  ;;  %v5463_v22 = vadd.f32 %v5365_v39, %v5363_v37 }
 0x23e   : > { %v5407_v3 = vpop.f32.mrf.mxu1  ;;  %v5409_v49 = vpop.f32.mrf.mxu0  ;;  %v2449_v33 = vadd.f32 %v5387_v51, %v5385_v48 }
 0x23f   : > { %5615 = vst [vmem:[#allocation8_spill] sm:$0xff] %v5407_v3  ;;  %5616 = vst [vmem:[#allocation9_spill] sm:$0xff] %v5409_v49  ;;  %v2628_v39 = vadd.f32 %v4300_v58, %v2121_v16 }
 0x241   : > { %v5411_v50 = vpop.f32.mrf.mxu1 }
 0x242   : > { %5617 = vst [vmem:[#allocation10_spill] sm:$0xff] %v5411_v50  ;;  %v5413_v7 = vpop.f32.mrf.mxu0 }
 0x243   : > { %5618 = vst [vmem:[#allocation11_spill] sm:$0xff] %v5413_v7  ;;  %v5415_v8 = vpop.f32.mrf.mxu1 }
 0x244   : > { %5619 = vst [vmem:[#allocation19_spill] sm:$0xff] %v5415_v8  ;;  %v5417_v60 = vpop.f32.mrf.mxu0 }
 0x245   : > { %5620 = vst [vmem:[#allocation12_spill] sm:$0xff] %v5417_v60 }
 0x247   : > { %v5419_v61 = vpop.f32.mrf.mxu1 }
 0x248   : > { %5621 = vst [vmem:[#allocation13_spill] sm:$0xff] %v5419_v61  ;;  %v5421_v13 = vpop.f32.mrf.mxu0 }
 0x249   : > { %5622 = vst [vmem:[#allocation20_spill] sm:$0xff] %v5421_v13  ;;  %v5423_v43 = vpop.f32.mrf.mxu1 }
 0x24a   : > { %5623 = vst [vmem:[#allocation14_spill] sm:$0xff] %v5423_v43  ;;  %v5425_v19 = vpop.f32.mrf.mxu0  ;;  %v2111_v43 = vadd.f32 %v5329_v21, %v5327_v20  ;;  %v2141_v20 = vadd.f32 %v5353_v11, %v5351_v31  ;;  %v5455_v21 = vadd.f32 %v5357_v32, %v5355_v38  ;;  %v2439_v38 = vadd.f32 %v5379_v45, %v5377_v44 }
 0x24b   : > { %5624 = vst [vmem:[#allocation15_spill] sm:$0xff] %v5425_v19  ;;  %v2106_v19 = vadd.f32 %v5333_v0, %v5331_v2  ;;  %v2419_v2 = vadd.f32 %v4266_v27, %v4235_v40  ;;  %v2434_v32 = vadd.f32 %v5383_v47, %v5381_v46 }
 0x24c   : > { %v2626_v0 = vadd.f32 %v4297_v42, %v2111_v43 }
 0x24d   : > { %v4359_v63 = vpop.f32.mrf.mxu1  ;;  %v4390_v14 = vpop.f32.mrf.mxu0 }
 0x24e   : > { %v2972_v31 = vadd.f32 %v4359_v63, %v2626_v0 }
 0x24f   : > { %v2922_v17 = vpop.f32.mrf.mxu1  ;;  %v3095_v18 = vpop.f32.mrf.mxu0 }
 0x251   : > { %v4362_v49 = vpop.f32.mrf.mxu1  ;;  %v4393_v3 = vpop.f32.mrf.mxu0 }
 0x252   : > { %v2974_v46 = vadd.f32 %v4362_v49, %v2628_v39 }
 0x253   : > { %v2932_v50 = vpop.f32.mrf.mxu1  ;;  %v3105_v60 = vpop.f32.mrf.mxu0 }
 0x255   : > { %v5427_v7 = vpop.f32.mrf.mxu1  ;;  %v5439_v13 = vpop.f32.mrf.mxu0 }
 0x256   : > { %5625 = vst [vmem:[#allocation21_spill] sm:$0xff] %v5427_v7  ;;  %v2116_v7 = vadd.f32 %v5341_v25, %v5339_v23  ;;  %v2414_v23 = vadd.f32 %v5369_v5, %v5367_v41  ;;  %v2429_v25 = vadd.f32 %v4269_v24, %v5371_v12  ;;  %v2444_v5 = vadd.f32 %v5391_v53, %v5389_v52 }
 0x257   : > { %v5429_v8 = vpop.f32.mrf.mxu1  ;;  %v3115_v11 = vpop.f32.mrf.mxu0  ;;  %v5482_v12 = vadd.f32 %v5395_v34, %v5393_v54  ;;  %v5491_v52 = vadd.f32 %v5399_v15, %v5397_v55  ;;  %v5629_v54 = vld [vmem:[#allocation6_spill] sm:$0xff]  ;;  %v5630_v55 = vld [vmem:[#allocation7_spill] sm:$0xff] }
 0x258   : > { %5626 = vst [vmem:[#allocation16_spill] sm:$0xff] %v5429_v8  ;;  %v2131_v8 = vadd.f32 %v5345_v29, %v5343_v28  ;;  %v2424_v29 = vadd.f32 %v5375_v10, %v5373_v4  ;;  %v2798_v36 = vadd.f32 %v2749_v57, %v2414_v23  ;;  %v2801_v24 = vadd.f32 %v4331_v35, %v2429_v25  ;;  %v5487_v10 = vld [vmem:[%s5570_s4] ss:$0 sm:$0xff] }
 0x259   : > { %v5431_v6 = vpop.f32.mrf.mxu1  ;;  %v2627_v4 = vadd.f32 %v2586_v59, %v2116_v7  ;;  %v4399_v47 = vpop.f32.mrf.mxu0  ;;  %v2803_v15 = vadd.f32 %v5630_v55, %v2439_v38  ;;  %v5631_v59 = vld [vmem:[#allocation8_spill] sm:$0xff] }
 0x25a   : > { %5627 = vst [vmem:[#allocation17_spill] sm:$0xff] %v5431_v6  ;;  %v3144_v45 = vadd.f32 %v3095_v18, %v2798_v36  ;;  %v2800_v53 = vadd.f32 %v5401_v62, %v2424_v29  ;;  %v2630_v34 = vadd.f32 %v5629_v54, %v2131_v8  ;;  %v3147_v42 = vadd.f32 %v4393_v3, %v2801_v24  ;;  %v5634_v18 = vld [vmem:[#allocation10_spill] sm:$0xff]  ;;  %v5637_v36 = vld [vmem:[#allocation19_spill] sm:$0xff] }
 0x25b   : > { %v5433_v61 = vpop.f32.mrf.mxu1  ;;  %v3149_v0 = vadd.f32 %v5439_v13, %v2803_v15 }
 0x25c   : > { %5628 = vst [vmem:[#allocation18_spill] sm:$0xff] %v5433_v61  ;;  %v2126_v61 = vadd.f32 %v5349_v26, %v5347_v30  ;;  %v2799_v30 = vadd.f32 %v4328_v9, %v2419_v2  ;;  %v2625_v26 = vadd.f32 %v2576_v56, %v2106_v19  ;;  %v2973_v56 = vadd.f32 %v2932_v50, %v2627_v4  ;;  %v3125_v50 = vpop.f32.mrf.mxu0 }
 0x25d   : > { %v3146_v16 = vadd.f32 %v3105_v60, %v2800_v53  ;;  %v5632_v3 = vld [vmem:[#allocation21_spill] sm:$0xff]  ;;  %v2632_v2 = vadd.f32 %v5634_v18, %v2141_v20 }
 0x25e   : > { %v5449_v6 = vpop.f32.mrf.mxu1  ;;  %v3145_v40 = vadd.f32 %v4390_v14, %v2799_v30  ;;  %v2971_v27 = vadd.f32 %v2922_v17, %v2625_v26  ;;  %v2629_v62 = vadd.f32 %v5631_v59, %v2126_v61  ;;  %v2976_v49 = vadd.f32 %v5632_v3, %v2630_v34  ;;  %v5633_v14 = vld [vmem:[#allocation9_spill] sm:$0xff] }
 0x25f   : > { %v2802_v17 = vadd.f32 %v5633_v14, %v2434_v32  ;;  %v5635_v23 = vld [vmem:[#allocation16_spill] sm:$0xff]  ;;  %v2631_v32 = vadd.f32 %v5637_v36, %v5455_v21 }
 0x260   : > { %v5468_v28 = vpop.f32.mrf.mxu1  ;;  %v2975_v25 = vadd.f32 %v5635_v23, %v2629_v62 }
 0x261   : > { %v3148_v20 = vadd.f32 %v3115_v11, %v2802_v17 }
 0x262   : > { %v4421_v37 = vpop.f32.mrf.mxu1 }
 0x263   : > { %v3318_v41 = vadd.f32 %v4421_v37, %v2972_v31  ;;  %v5636_v31 = vld [vmem:[#allocation11_spill] sm:$0xff]  ;;  %v5638_v37 = vld [vmem:[#allocation17_spill] sm:$0xff] }
 0x264   : > { %v3268_v44 = vpop.f32.mrf.mxu1  ;;  %v2805_v38 = vadd.f32 %v5636_v31, %v2449_v33  ;;  %v2978_v13 = vadd.f32 %v5638_v37, %v2632_v2  ;;  %v5640_v33 = vld [vmem:[#allocation13_spill] sm:$0xff] }
 0x265   : > { %v3328_v48 = vadd.f32 %v3318_v41, %v3145_v40  ;;  %v3317_v51 = vadd.f32 %v3268_v44, %v2971_v27  ;;  %v4402_v40 = vpop.f32.mrf.mxu0  ;;  %v5639_v44 = vld [vmem:[#allocation12_spill] sm:$0xff] }
 0x266   : > { %v4424_v9 = vpop.f32.mrf.mxu1  ;;  %v3151_v21 = vadd.f32 %v4399_v47, %v2805_v38 }
 0x267   : > { %v3345_v57 = vadd.f32 %v5487_v10, %v3328_v48  ;;  %v3327_v58 = vadd.f32 %v3317_v51, %v3144_v45  ;;  %v3320_v35 = vadd.f32 %v4424_v9, %v2974_v46  ;;  %v2804_v45 = vadd.f32 %v5639_v44, %v2444_v5  ;;  %v5641_v48 = vld [vmem:[#allocation18_spill] sm:$0xff]  ;;  %v5642_v5 = vld [vmem:[#allocation20_spill] sm:$0xff] }
 0x268   : > { %v3278_v7 = vpop.f32.mrf.mxu1  ;;  %v2634_v46 = vadd.f32 %v5640_v33, %v5459_v1  ;;  %v2977_v11 = vadd.f32 %v5641_v48, %v2631_v32  ;;  %v2807_v9 = vadd.f32 %v5642_v5, %v5482_v12  ;;  %v5643_v1 = vld [vmem:[#allocation14_spill] sm:$0xff]  ;;  %v5644_v12 = vld [vmem:[#allocation15_spill] sm:$0xff] }
 0x269   : > { %v3355_v8 = vmax.f32 %v3345_v57, 0.0  ;;  %v3344_v43 = vadd.f32 %v5487_v10, %v3327_v58  ;;  %v3330_v19 = vadd.f32 %v3320_v35, %v3147_v42  ;;  %v3319_v63 = vadd.f32 %v3278_v7, %v2973_v56  ;;  %v3135_v35 = vpop.f32.mrf.mxu0 }
 0x26a   : > { %v4427_v61 = vpop.f32.mrf.mxu1  ;;  %v2633_v56 = vadd.f32 %v5643_v1, %v5463_v22  ;;  %v3150_v47 = vadd.f32 %v3125_v50, %v2804_v45  ;;  %v2980_v57 = vadd.f32 %v5449_v6, %v2634_v46  ;;  %v3153_v22 = vadd.f32 %v4402_v40, %v2807_v9 }
 0x26b   : > { %3643 = vst.msk [vmem:[%s5501_s25 + $0x6] sm:$0xfc] %vm3366_vm6, %v3355_v8  ;;  %v3354_v60 = vmax.f32 %v3344_v43, 0.0  ;;  %v3347_v29 = vadd.f32 %v5487_v10, %v3330_v19  ;;  %v3329_v30 = vadd.f32 %v3319_v63, %v3146_v16  ;;  %v3322_v26 = vadd.f32 %v4427_v61, %v2976_v49 }
 0x26c   : > { %v3288_v39 = vpop.f32.mrf.mxu1  ;;  %v2806_v16 = vadd.f32 %v5644_v12, %v5491_v52  ;;  %v2979_v3 = vadd.f32 %v5468_v28, %v2633_v56 }
 0x26d   : > { %3364 = vst.msk [vmem:[%s5501_s25] sm:$0xff] %vm233_vm3, %v3354_v60  ;;  %v3357_v27 = vmax.f32 %v3347_v29, 0.0  ;;  %v3346_v41 = vadd.f32 %v5487_v10, %v3329_v30  ;;  %v3332_v24 = vadd.f32 %v3322_v26, %v3149_v0  ;;  %v3321_v4 = vadd.f32 %v3288_v39, %v2975_v25 }
 0x26e   : > { %v4430_v51 = vpop.f32.mrf.mxu1  ;;  %v3152_v43 = vadd.f32 %v3135_v35, %v2806_v16 }
 0x26f   : > { %3646 = vst.msk [vmem:[%s5501_s25 + $0x14] sm:$0xf] %vm3372_vm7, %v3357_v27  ;;  %v3356_v53 = vmax.f32 %v3346_v41, 0.0  ;;  %v3349_v54 = vadd.f32 %v5487_v10, %v3332_v24  ;;  %v3331_v34 = vadd.f32 %v3321_v4, %v3148_v20  ;;  %v3324_v42 = vadd.f32 %v4430_v51, %v2978_v13 }
 0x270   : > { %3647 = vst.msk [vmem:[%s5501_s25 + $0x12] sm:$0xc0] %vm3375_vm8, %v3357_v27  ;;  %v3298_v58 = vpop.f32.mrf.mxu1 }
 0x271   : > { %3644 = vst.msk [vmem:[%s5501_s25 + $0xe] sm:$0x3] %vm1801_vm5, %v3356_v53  ;;  %v3359_v55 = vmax.f32 %v3349_v54, 0.0  ;;  %v3348_v15 = vadd.f32 %v5487_v10, %v3331_v34  ;;  %v3334_v59 = vadd.f32 %v3324_v42, %v3151_v21  ;;  %v3323_v62 = vadd.f32 %v3298_v58, %v2977_v11 }
 0x272   : > { %3645 = vst.msk [vmem:[%s5501_s25 + $0xc] sm:$0xf0] %vm3370_vm9, %v3356_v53  ;;  %v4433_v6 = vpop.f32.mrf.mxu1 }
 0x273   : > { %3649 = vst.msk [vmem:[%s5501_s25 + $0x20] sm:$0xff] %vm233_vm3, %v3359_v55  ;;  %v3358_v49 = vmax.f32 %v3348_v15, 0.0  ;;  %v3351_v7 = vadd.f32 %v5487_v10, %v3334_v59  ;;  %v3333_v50 = vadd.f32 %v3323_v62, %v3150_v47  ;;  %v3326_v8 = vadd.f32 %v4433_v6, %v2980_v57 }
 0x274   : > { %v3308_v19 = vpop.f32.mrf.mxu1 }
 0x275   : > { %3648 = vst.msk [vmem:[%s5501_s25 + $0x1a] sm:$0x3f] %vm3377_vm10, %v3358_v49  ;;  %v3361_v52 = vmax.f32 %v3351_v7, 0.0  ;;  %v3350_v28 = vadd.f32 %v5487_v10, %v3333_v50  ;;  %v3336_v63 = vadd.f32 %v3326_v8, %v3153_v22  ;;  %v3325_v14 = vadd.f32 %v3308_v19, %v2979_v3 }
 0x277   : > { %3651 = vst.msk [vmem:[%s5501_s25 + $0x2e] sm:$0x3] %vm1801_vm5, %v3361_v52  ;;  %v3360_v17 = vmax.f32 %v3350_v28, 0.0  ;;  %v3353_v18 = vadd.f32 %v5487_v10, %v3336_v63  ;;  %v3335_v2 = vadd.f32 %v3325_v14, %v3152_v43 }
 0x278   : > { %3652 = vst.msk [vmem:[%s5501_s25 + $0x2c] sm:$0xf0] %vm3370_vm9, %v3361_v52 }
 0x279   : > { %3650 = vst.msk [vmem:[%s5501_s25 + $0x26] sm:$0xfc] %vm3366_vm6, %v3360_v17  ;;  %v3363_v0 = vmax.f32 %v3353_v18, 0.0  ;;  %v3352_v23 = vadd.f32 %v5487_v10, %v3335_v2 }
 0x27b   : > { %3655 = vst.msk [vmem:[%s5501_s25 + $0x3a] sm:$0x3f] %vm3377_vm10, %v3363_v0  ;;  %v3362_v25 = vmax.f32 %v3352_v23, 0.0 }
 0x27d   : > { %3653 = vst.msk [vmem:[%s5501_s25 + $0x34] sm:$0xf] %vm3372_vm7, %v3362_v25 }
 0x27e   : > { %3654 = vst.msk [vmem:[%s5501_s25 + $0x32] sm:$0xc0] %vm3375_vm8, %v3362_v25 }
 0x27f PF: > { %s15_s18 = sadd.s32 1, %s4449_s18  }
 0x280   : > { %p12_p4 = scmp.ge.s32.totalorder %s15_s18, 4  }
 0x282   :  { %14 = sbr.rel (!%p12_p4) target bundleno = 1 (0x1), region = 84 }

</bundles_post_ra>
